<compile_context>
chip_gen: v7x
topology: tpu7x:2x2x1
jax: 0.10.0
libtpu: 0.0.40
codegen_flags: <defaults>
</compile_context>

<pallas_src>
import functools

import jax
import jax.numpy as jnp
from jax.experimental import pallas as pl
from jax.experimental.pallas import tpu as pltpu


# -----------------------------------------------------------------------------
# Pallas kernel: MAB forward for a block of batch elements per grid step.
# -----------------------------------------------------------------------------
def mab_kernel(x_ref, y_ref, m_ref, bm_ref,
               wq_ref, wkv_ref, wo_ref,
               g1_ref, be1_ref,
               w1_ref, b1_ref, w2_ref, b2_ref,
               g2_ref, be2_ref,
               o_ref,
               *, n_heads, scale, eps, neg_slope, compute_dtype):
    f32 = jnp.float32
    cd = compute_dtype

    bb, Lq, D = x_ref.shape
    Lk = y_ref.shape[1]
    HLk = n_heads * Lk

    # ---- activations arrive already in compute dtype; flatten rows for GEMMs ----
    x2c = x_ref[...].reshape(bb * Lq, D)              # (bb*Lq, D), cd
    y2c = y_ref[...].reshape(bb * Lk, D)              # (bb*Lk, D), cd
    x2f = x2c.astype(f32)                             # f32 residual / LN path

    # ---- projections: Q and fused K|V (bf16 MXU operands, f32 accumulation) -----
    q2 = jnp.dot(x2c, wq_ref[...], preferred_element_type=f32)    # (bb*Lq, D)
    kv2 = jnp.dot(y2c, wkv_ref[...], preferred_element_type=f32)  # (bb*Lk, 2D)
    q3 = q2.reshape(bb, Lq, D).astype(cd)
    k3 = kv2[:, :D].reshape(bb, Lk, D).astype(cd)
    v3 = kv2[:, D:].reshape(bb, Lk, D).astype(cd)

    # ---- mask handling (hoisted): 0/1 zeroing mask + per-(b,q) scale/count ------
    # (this reproduces the PyTorch relu-activation -inf/isinf dance exactly,
    #  with scale/count factored out of the key-sum and applied to the context)
    mask_f = m_ref[...].astype(f32)                   # (bb, Lq, Lk), 0.0 / 1.0
    count = jnp.sum(mask_f, axis=-1, keepdims=True)   # (bb, Lq, 1)
    coef_q = scale / jnp.maximum(count, 1.0)          # exact reciprocal (cheap)

    # ---- head-batched attention via block-diagonal lane packing -----------------
    # Column j = h*Lk + k of the score tile belongs to head h; feature d belongs to
    # head d // chunk.  bm (constant input) is the (HLk, D) block-diagonal 0/1 mask,
    # so the 2*H tiny per-head matmuls become 2 dense batched contractions with a
    # lane-dense (Lq, H*Lk) score tile and no per-step iota/divide work.
    bm = bm_ref[...]                                              # (HLk, D), cd
    kbig = jnp.concatenate([k3] * n_heads, axis=1) * bm[None]     # (bb, HLk, D)
    vbig = jnp.concatenate([v3] * n_heads, axis=1) * bm[None]

    s = jnp.einsum('bqd,bkd->bqk', q3, kbig,
                   preferred_element_type=f32)                    # (bb, Lq, HLk)
    mask_rep = jnp.concatenate([mask_f] * n_heads, axis=-1)       # (bb, Lq, HLk)
    a = jnp.maximum(s, 0.0) * mask_rep                            # relu + zeroing
    c3 = jnp.einsum('bqk,bkd->bqd', a.astype(cd), vbig,
                    preferred_element_type=f32)                   # (bb, Lq, D)
    c3 = c3 * coef_q                                              # scale / count
    c2 = c3.reshape(bb * Lq, D)

    attn = jnp.dot(c2.astype(cd), wo_ref[...], preferred_element_type=f32)

    # ---- residual + LayerNorm + feed-forward (elementwise math in f32) ----------
    def layer_norm(t, g, b):
        mu = jnp.mean(t, axis=-1, keepdims=True)
        var = jnp.mean((t - mu) ** 2, axis=-1, keepdims=True)
        return (t - mu) * jax.lax.rsqrt(var + eps) * g + b

    h1 = layer_norm(x2f + attn, g1_ref[...], be1_ref[...])        # (bb*Lq, D)

    z = jnp.dot(h1.astype(cd), w1_ref[...], preferred_element_type=f32) + b1_ref[...]
    z = jnp.where(z > 0, z, neg_slope * z)                        # LeakyReLU(0.2)
    ff = jnp.dot(z.astype(cd), w2_ref[...], preferred_element_type=f32) + b2_ref[...]

    e = layer_norm(h1 + ff, g2_ref[...], be2_ref[...])
    # NOTE: a lane-dense (bb, Lq*D) out spec would avoid 32-lane masked stores, but
    # at D=32 / 2 KiB per step the in-kernel relayout is not obviously cheaper.
    o_ref[...] = e.reshape(bb, Lq, D).astype(o_ref.dtype)


# -----------------------------------------------------------------------------
# VMEM-derived block picking + chip queries.
# -----------------------------------------------------------------------------
def _tensorcores_per_chip():
    """>=2 only on v7x-style chips (where leaving >=2 grid steps matters)."""
    try:
        kind = jax.devices()[0].device_kind.lower()
    except Exception:
        return 1
    return 2 if ("7x" in kind or "v7" in kind) else 1


def _vmem_budget_bytes():
    """~70% of physical VMEM; conservative 64 MiB fallback (v7x physical)."""
    try:
        cap = int(pltpu.get_tpu_info().vmem_capacity_bytes)
    except Exception:
        cap = 64 * 1024 * 1024
    return int(cap * 0.7)


def _per_element_vmem_bytes(Lq, Lk, D, H, act_bytes):
    """Rough per-batch-element footprint: double-buffered tiles + intermediates."""
    HLk = H * Lk
    io = 2 * (Lq * D * act_bytes + Lk * D * act_bytes + Lq * Lk * 1 + Lq * D * 4)
    inter = ((Lq + Lk) * D * 4               # f32 copies of activations
             + Lq * D * 4 + Lk * 2 * D * 4   # q / fused kv projections (f32)
             + 4 * HLk * D * 4               # replicated block-diagonal K, V
             + 3 * Lq * HLk * 4              # scores, replicated mask, masked scores
             + 6 * Lq * D * 4                # context / attn / h1 / ff / e / out
             + Lq * 4 * D * 6)               # FF hidden (f32 + compute-dtype copy)
    return io + 2 * inter                    # 2x headroom for vregs / compiler copies


def _weights_vmem_bytes(D, H, Lk, w_bytes):
    dense = 12 * D * D + H * Lk * D          # wq + wkv + wo + w1 + w2 + bm
    vecs = 8 * D + 2 * 4 * D                 # ln scales/offsets + biases (f32)
    return 2 * (dense * w_bytes + vecs * 4)  # pipeline double-buffers consts too


def _pick_block_b(B, Lq, Lk, D, H, act_bytes, budget, prefer_two_steps):
    """Largest divisor of B whose estimated VMEM use fits the budget.

    On single-TC chips (v5e/v6e) the grid is a serial loop, so fewer / fatter steps
    strictly win; only on 2-TC chips do we keep >=2 steps when feasible.
    """
    per = _per_element_vmem_bytes(Lq, Lk, D, H, act_bytes)
    fixed = _weights_vmem_bytes(D, H, Lk, act_bytes)
    feas = [d for d in range(1, B + 1) if B % d == 0 and fixed + d * per <= budget]
    if not feas:
        feas = [1]
    best = max(feas)
    if prefer_two_steps:
        multi = [d for d in feas if B // d >= 2]
        if multi:
            best = max(multi)
    return best


# -----------------------------------------------------------------------------
# Wrappers.  mab_forward_nlc works in (B, L, D) layout (no HBM transposes);
# mab_forward keeps the PyTorch (B, D, L) contract.
# -----------------------------------------------------------------------------
def mab_forward_nlc(x, y, mask, params, *, n_heads=8,
                    compute_dtype=jnp.bfloat16, block_b=None):
    B, Lq, D = x.shape
    Lk = y.shape[1]
    assert D % n_heads == 0, "n_units must be divisible by n_heads"
    chunk = D // n_heads
    HLk = n_heads * Lk

    cd = compute_dtype
    cd_bytes = jnp.dtype(cd).itemsize
    scale = 1.0 / float(chunk ** 0.5)

    budget = _vmem_budget_bytes()
    if block_b is None:
        block_b = _pick_block_b(B, Lq, Lk, D, n_heads, cd_bytes, budget,
                                prefer_two_steps=_tensorcores_per_chip() >= 2)
    assert B % block_b == 0

    # constant block-diagonal head-packing mask (built once, tiny)
    j_head = jnp.arange(HLk, dtype=jnp.int32)[:, None] // Lk
    d_head = jnp.arange(D, dtype=jnp.int32)[None, :] // chunk
    bm = (j_head == d_head).astype(cd)                            # (HLk, D)

    # fused K|V projection weight (one GEMM on the y path instead of two)
    wkv = jnp.concatenate([params["wk"], params["wv"]], axis=1)   # (D, 2D)

    kernel = functools.partial(
        mab_kernel, n_heads=n_heads, scale=scale, eps=1e-6, neg_slope=0.2,
        compute_dtype=cd)

    def const(shape):
        return pl.BlockSpec(shape, lambda b, _n=len(shape): (0,) * _n)

    # NOTE(scaling): at D >= ~700-800 (v7x, 64 MiB VMEM) the resident weights plus
    # the (rows, 4D) f32 FF intermediate stop fitting; at that point add an
    # 'arbitrary' grid axis over the 4D hidden dim (accumulate ff in VMEM scratch)
    # and/or switch the head trick to head-grouped contractions.
    out = pl.pallas_call(
        kernel,
        out_shape=jax.ShapeDtypeStruct((B, Lq, D), jnp.float32),
        grid=(B // block_b,),
        in_specs=[
            pl.BlockSpec((block_b, Lq, D), lambda b: (b, 0, 0)),    # x (compute dtype)
            pl.BlockSpec((block_b, Lk, D), lambda b: (b, 0, 0)),    # y (compute dtype)
            pl.BlockSpec((block_b, Lq, Lk), lambda b: (b, 0, 0)),   # mask (int8)
            const((HLk, D)),                                        # block-diag mask
            const((D, D)), const((D, 2 * D)), const((D, D)),        # wq, wkv, wo
            const((1, D)), const((1, D)),                           # ln1 gamma/beta
            const((D, 4 * D)), const((1, 4 * D)),                   # ff w1 b1
            const((4 * D, D)), const((1, D)),                       # ff w2 b2
            const((1, D)), const((1, D)),                           # ln2 gamma/beta
        ],
        out_specs=pl.BlockSpec((block_b, Lq, D), lambda b: (b, 0, 0)),
        compiler_params=pltpu.CompilerParams(
            dimension_semantics=("parallel",),
            vmem_limit_bytes=budget),
    )(x.astype(cd), y.astype(cd), mask.astype(jnp.int8), bm,
      params["wq"].astype(cd), wkv.astype(cd), params["wo"].astype(cd),
      params["g1"].astype(jnp.float32), params["be1"].astype(jnp.float32),
      params["w1"].astype(cd), params["b1"].astype(jnp.float32),
      params["w2"].astype(cd), params["b2"].astype(jnp.float32),
      params["g2"].astype(jnp.float32), params["be2"].astype(jnp.float32))
    return out


def mab_forward(x_ncl, y_ncl, mask, params, *, n_heads=8,
                compute_dtype=jnp.bfloat16, block_b=None):
    # (B, D, L) PyTorch layout in / out.
    x = jnp.transpose(x_ncl, (0, 2, 1))
    y = jnp.transpose(y_ncl, (0, 2, 1))
    out = mab_forward_nlc(x, y, mask, params, n_heads=n_heads,
                          compute_dtype=compute_dtype, block_b=block_b)
    return jnp.transpose(out, (0, 2, 1))


# -----------------------------------------------------------------------------
# Pure-JAX reference mirroring the PyTorch forward (correctness check).
# -----------------------------------------------------------------------------
def mab_reference(x_ncl, y_ncl, mask, p, *, n_heads=8):
    B, D, Lq = x_ncl.shape
    Lk = y_ncl.shape[2]
    chunk = D // n_heads
    scale = 1.0 / float(chunk ** 0.5)
    x = jnp.transpose(x_ncl, (0, 2, 1)).astype(jnp.float32)
    y = jnp.transpose(y_ncl, (0, 2, 1)).astype(jnp.float32)

    Q = x @ p["wq"]
    K = y @ p["wk"]
    V = y @ p["wv"]
    Qh = Q.reshape(B, Lq, n_heads, chunk)
    Kh = K.reshape(B, Lk, n_heads, chunk)
    Vh = V.reshape(B, Lk, n_heads, chunk)
    A = jnp.einsum("bqhc,bkhc->bhqk", Qh, Kh)

    mf = mask.astype(jnp.float32)
    count = mf.sum(axis=2, keepdims=True)                      # (B, Lq, 1)
    n_el = jnp.where(mask, count, 1.0)[:, None]                # (B, 1, Lq, Lk)
    A = jnp.maximum(A, 0.0) * scale
    A = jnp.where(mask[:, None], A, -jnp.inf)
    A = A / n_el
    A = jnp.where(jnp.isinf(A), 0.0, A)

    C = jnp.einsum("bhqk,bkhc->bqhc", A, Vh).reshape(B, Lq, D)
    attn = C @ p["wo"]

    def ln(t, g, b):
        mu = t.mean(-1, keepdims=True)
        var = ((t - mu) ** 2).mean(-1, keepdims=True)
        return (t - mu) / jnp.sqrt(var + 1e-6) * g + b

    h1 = ln(x + attn, p["g1"], p["be1"])
    z = h1 @ p["w1"] + p["b1"]
    z = jnp.where(z > 0, z, 0.2 * z)
    ff = z @ p["w2"] + p["b2"]
    e = ln(h1 + ff, p["g2"], p["be2"])
    return jnp.transpose(e, (0, 2, 1))


# -----------------------------------------------------------------------------
# Deterministic parameter init (synthetic; shapes follow MAB(n_units, n_heads)).
# -----------------------------------------------------------------------------
def init_params(key, n_units):
    D = n_units
    ks = jax.random.split(key, 12)
    s = lambda fan_in: 1.0 / jnp.sqrt(fan_in)
    return {
        # attention projections, pre-transposed to (in, out)
        "wq": jax.random.normal(ks[0], (D, D), jnp.float32) * s(D),
        "wk": jax.random.normal(ks[1], (D, D), jnp.float32) * s(D),
        "wv": jax.random.normal(ks[2], (D, D), jnp.float32) * s(D),
        "wo": jax.random.normal(ks[3], (D, D), jnp.float32) * s(D),
        # ln_1
        "g1": 1.0 + 0.1 * jax.random.normal(ks[4], (1, D), jnp.float32),
        "be1": 0.1 * jax.random.normal(ks[5], (1, D), jnp.float32),
        # feed-forward (w_1: D -> 4D with bias, w_2: 4D -> D with bias)
        "w1": jax.random.normal(ks[6], (D, 4 * D), jnp.float32) * s(D),
        "b1": 0.1 * jax.random.normal(ks[7], (1, 4 * D), jnp.float32),
        "w2": jax.random.normal(ks[8], (4 * D, D), jnp.float32) * s(4 * D),
        "b2": 0.1 * jax.random.normal(ks[9], (1, D), jnp.float32),
        # ln_2
        "g2": 1.0 + 0.1 * jax.random.normal(ks[10], (1, D), jnp.float32),
        "be2": 0.1 * jax.random.normal(ks[11], (1, D), jnp.float32),
    }


if __name__ == "__main__":
    B, D, Lq, Lk, H = 2, 32, 8, 16, 8

    key = jax.random.PRNGKey(0)
    kx, ky, km, kp = jax.random.split(key, 4)

    x = jax.random.normal(kx, (B, D, Lq), jnp.float32)          # (batch, n_units, n_queries)
    y = jax.random.normal(ky, (B, D, Lk), jnp.float32)          # (batch, n_units, n_keys)
    mask = jax.random.bernoulli(km, 0.7, (B, Lq, Lk))           # (batch, n_queries, n_keys) bool
    params = init_params(kp, D)

    ref = jax.block_until_ready(mab_reference(x, y, mask, params, n_heads=H))

    # exact path (f32 MXU operands / f32 activation I/O) -- tight-ish check
    out_f32 = jax.block_until_ready(
        mab_forward(x, y, mask, params, n_heads=H, compute_dtype=jnp.float32))
    assert out_f32.shape == (B, D, Lq), out_f32.shape
    err_f32 = float(jnp.max(jnp.abs(out_f32 - ref)))
    assert err_f32 < 5e-2, f"f32 kernel mismatch vs reference: {err_f32}"

    # fast path (bf16 activation I/O + MXU operands, f32 accumulate) -- loose check
    out_bf16 = jax.block_until_ready(
        mab_forward(x, y, mask, params, n_heads=H, compute_dtype=jnp.bfloat16))
    err_bf16 = float(jnp.max(jnp.abs(out_bf16 - ref)))
    assert err_bf16 < 3e-1, f"bf16 kernel mismatch vs reference: {err_bf16}"

    print("KERNEL_OK")
</pallas_src>

<mosaic_0001>
module attributes {stable_mosaic.version = 11 : i64} {
  func.func @mab_kernel(%arg0: i32, %arg1: memref<2x8x32xf32, #tpu.memory_space<vmem>>, %arg2: memref<2x16x32xf32, #tpu.memory_space<vmem>>, %arg3: memref<2x8x16xi8, #tpu.memory_space<vmem>>, %arg4: memref<128x32xf32, #tpu.memory_space<vmem>>, %arg5: memref<32x32xf32, #tpu.memory_space<vmem>>, %arg6: memref<32x64xf32, #tpu.memory_space<vmem>>, %arg7: memref<32x32xf32, #tpu.memory_space<vmem>>, %arg8: memref<1x32xf32, #tpu.memory_space<vmem>>, %arg9: memref<1x32xf32, #tpu.memory_space<vmem>>, %arg10: memref<32x128xf32, #tpu.memory_space<vmem>>, %arg11: memref<1x128xf32, #tpu.memory_space<vmem>>, %arg12: memref<128x32xf32, #tpu.memory_space<vmem>>, %arg13: memref<1x32xf32, #tpu.memory_space<vmem>>, %arg14: memref<1x32xf32, #tpu.memory_space<vmem>>, %arg15: memref<1x32xf32, #tpu.memory_space<vmem>>, %arg16: memref<2x8x32xf32, #tpu.memory_space<vmem>>) attributes {dimension_semantics = [#tpu.dimension_semantics<parallel>], iteration_bounds = array<i64: 1>, scalar_prefetch = 0 : i64, scratch_operands = 0 : i64, tpu.core_type = #tpu.core_type<tc>, window_params = [{transform_indices = @transform_0, window_bounds = array<i64: 2, 8, 32>}, {transform_indices = @transform_1, window_bounds = array<i64: 2, 16, 32>}, {transform_indices = @transform_2, window_bounds = array<i64: 2, 8, 16>}, {pipeline_mode = #tpu.pipeline_mode<synchronous>, transform_indices = @transform_3, window_bounds = array<i64: 128, 32>}, {pipeline_mode = #tpu.pipeline_mode<synchronous>, transform_indices = @transform_4, window_bounds = array<i64: 32, 32>}, {pipeline_mode = #tpu.pipeline_mode<synchronous>, transform_indices = @transform_5, window_bounds = array<i64: 32, 64>}, {pipeline_mode = #tpu.pipeline_mode<synchronous>, transform_indices = @transform_6, window_bounds = array<i64: 32, 32>}, {pipeline_mode = #tpu.pipeline_mode<synchronous>, transform_indices = @transform_7, window_bounds = array<i64: 1, 32>}, {pipeline_mode = #tpu.pipeline_mode<synchronous>, transform_indices = @transform_8, window_bounds = array<i64: 1, 32>}, {pipeline_mode = #tpu.pipeline_mode<synchronous>, transform_indices = @transform_9, window_bounds = array<i64: 32, 128>}, {pipeline_mode = #tpu.pipeline_mode<synchronous>, transform_indices = @transform_10, window_bounds = array<i64: 1, 128>}, {pipeline_mode = #tpu.pipeline_mode<synchronous>, transform_indices = @transform_11, window_bounds = array<i64: 128, 32>}, {pipeline_mode = #tpu.pipeline_mode<synchronous>, transform_indices = @transform_12, window_bounds = array<i64: 1, 32>}, {pipeline_mode = #tpu.pipeline_mode<synchronous>, transform_indices = @transform_13, window_bounds = array<i64: 1, 32>}, {pipeline_mode = #tpu.pipeline_mode<synchronous>, transform_indices = @transform_14, window_bounds = array<i64: 1, 32>}, {transform_indices = @transform_15, window_bounds = array<i64: 2, 8, 32>}]} {
    %c0 = arith.constant 0 : index
    %c0_0 = arith.constant 0 : index
    %c0_1 = arith.constant 0 : index
    %0 = vector.load %arg1[%c0, %c0_0, %c0_1] : memref<2x8x32xf32, #tpu.memory_space<vmem>>, vector<2x8x32xf32>
    %1 = vector.shape_cast %0 : vector<2x8x32xf32> to vector<16x32xf32>
    %c0_2 = arith.constant 0 : index
    %c0_3 = arith.constant 0 : index
    %c0_4 = arith.constant 0 : index
    %2 = vector.load %arg2[%c0_2, %c0_3, %c0_4] : memref<2x16x32xf32, #tpu.memory_space<vmem>>, vector<2x16x32xf32>
    %3 = vector.shape_cast %2 : vector<2x16x32xf32> to vector<32x32xf32>
    %c0_5 = arith.constant 0 : index
    %c0_6 = arith.constant 0 : index
    %4 = vector.load %arg5[%c0_5, %c0_6] : memref<32x32xf32, #tpu.memory_space<vmem>>, vector<32x32xf32>
    %cst = arith.constant dense<0.000000e+00> : vector<16x32xf32>
    %5 = tpu.matmul %1, %4, %cst {dimension_numbers = #tpu.dot_dimension_numbers<[1], [0], [0], [1], [0, 0, 1, 1], [], []>} : vector<16x32xf32>, vector<32x32xf32>, vector<16x32xf32> -> vector<16x32xf32>
    %c0_7 = arith.constant 0 : index
    %c0_8 = arith.constant 0 : index
    %6 = vector.load %arg6[%c0_7, %c0_8] : memref<32x64xf32, #tpu.memory_space<vmem>>, vector<32x64xf32>
    %cst_9 = arith.constant dense<0.000000e+00> : vector<32x64xf32>
    %7 = tpu.matmul %3, %6, %cst_9 {dimension_numbers = #tpu.dot_dimension_numbers<[1], [0], [0], [1], [0, 0, 1, 1], [], []>} : vector<32x32xf32>, vector<32x64xf32>, vector<32x64xf32> -> vector<32x64xf32>
    %8 = vector.shape_cast %5 : vector<16x32xf32> to vector<2x8x32xf32>
    %9 = vector.extract_strided_slice %7 {offsets = [0, 0], sizes = [32, 32], strides = [1, 1]} : vector<32x64xf32> to vector<32x32xf32>
    %10 = vector.shape_cast %9 : vector<32x32xf32> to vector<2x16x32xf32>
    %11 = vector.extract_strided_slice %7 {offsets = [0, 32], sizes = [32, 32], strides = [1, 1]} : vector<32x64xf32> to vector<32x32xf32>
    %12 = vector.shape_cast %11 : vector<32x32xf32> to vector<2x16x32xf32>
    %c0_10 = arith.constant 0 : index
    %c0_11 = arith.constant 0 : index
    %c0_12 = arith.constant 0 : index
    %13 = vector.load %arg3[%c0_10, %c0_11, %c0_12] : memref<2x8x16xi8, #tpu.memory_space<vmem>>, vector<2x8x16xi8>
    %14 = arith.sitofp %13 : vector<2x8x16xi8> to vector<2x8x16xf32>
    %cst_13 = arith.constant dense<0.000000e+00> : vector<2x8xf32>
    %15 = vector.multi_reduction <add>, %14, %cst_13 [2] : vector<2x8x16xf32> to vector<2x8xf32>
    %16 = vector.shape_cast %15 : vector<2x8xf32> to vector<2x8x1xf32>
    %cst_14 = arith.constant 1.000000e+00 : f32
    %17 = vector.broadcast %cst_14 : f32 to vector<2x8x1xf32>
    %18 = arith.maximumf %16, %17 : vector<2x8x1xf32>
    %cst_15 = arith.constant 5.000000e-01 : f32
    %19 = vector.broadcast %cst_15 : f32 to vector<2x8x1xf32>
    %20 = arith.divf %19, %18 : vector<2x8x1xf32>
    %c0_16 = arith.constant 0 : index
    %c0_17 = arith.constant 0 : index
    %21 = vector.load %arg4[%c0_16, %c0_17] : memref<128x32xf32, #tpu.memory_space<vmem>>, vector<128x32xf32>
    %22 = tpu.concatenate %10, %10, %10, %10, %10, %10, %10, %10 in 1 : vector<2x16x32xf32>, vector<2x16x32xf32>, vector<2x16x32xf32>, vector<2x16x32xf32>, vector<2x16x32xf32>, vector<2x16x32xf32>, vector<2x16x32xf32>, vector<2x16x32xf32> -> vector<2x128x32xf32>
    %23 = vector.shape_cast %21 : vector<128x32xf32> to vector<1x128x32xf32>
    %24 = vector.broadcast %23 : vector<1x128x32xf32> to vector<2x128x32xf32>
    %25 = arith.mulf %22, %24 : vector<2x128x32xf32>
    %26 = tpu.concatenate %12, %12, %12, %12, %12, %12, %12, %12 in 1 : vector<2x16x32xf32>, vector<2x16x32xf32>, vector<2x16x32xf32>, vector<2x16x32xf32>, vector<2x16x32xf32>, vector<2x16x32xf32>, vector<2x16x32xf32>, vector<2x16x32xf32> -> vector<2x128x32xf32>
    %27 = vector.shape_cast %21 : vector<128x32xf32> to vector<1x128x32xf32>
    %28 = vector.broadcast %27 : vector<1x128x32xf32> to vector<2x128x32xf32>
    %29 = arith.mulf %26, %28 : vector<2x128x32xf32>
    "tpu.trace_start"() <{level = 10 : i32, message = "bqd,bkd->bqk"}> : () -> ()
    %cst_18 = arith.constant dense<0.000000e+00> : vector<2x8x128xf32>
    %30 = tpu.matmul %8, %25, %cst_18 {dimension_numbers = #tpu.dot_dimension_numbers<[2], [2], [1], [1], [0, 0, 0, 1, 1, 1], [0], [0]>} : vector<2x8x32xf32>, vector<2x128x32xf32>, vector<2x8x128xf32> -> vector<2x8x128xf32>
    "tpu.trace_stop"() : () -> ()
    %31 = tpu.concatenate %14, %14, %14, %14, %14, %14, %14, %14 in 2 : vector<2x8x16xf32>, vector<2x8x16xf32>, vector<2x8x16xf32>, vector<2x8x16xf32>, vector<2x8x16xf32>, vector<2x8x16xf32>, vector<2x8x16xf32>, vector<2x8x16xf32> -> vector<2x8x128xf32>
    %cst_19 = arith.constant 0.000000e+00 : f32
    %32 = vector.broadcast %cst_19 : f32 to vector<2x8x128xf32>
    %33 = arith.maximumf %30, %32 : vector<2x8x128xf32>
    %34 = arith.mulf %33, %31 : vector<2x8x128xf32>
    "tpu.trace_start"() <{level = 10 : i32, message = "bqk,bkd->bqd"}> : () -> ()
    %cst_20 = arith.constant dense<0.000000e+00> : vector<2x8x32xf32>
    %35 = tpu.matmul %34, %29, %cst_20 {dimension_numbers = #tpu.dot_dimension_numbers<[2], [1], [1], [2], [0, 0, 0, 1, 1, 2], [0], [0]>} : vector<2x8x128xf32>, vector<2x128x32xf32>, vector<2x8x32xf32> -> vector<2x8x32xf32>
    "tpu.trace_stop"() : () -> ()
    %36 = vector.broadcast %20 : vector<2x8x1xf32> to vector<2x8x32xf32>
    %37 = arith.mulf %35, %36 : vector<2x8x32xf32>
    %38 = vector.shape_cast %37 : vector<2x8x32xf32> to vector<16x32xf32>
    %c0_21 = arith.constant 0 : index
    %c0_22 = arith.constant 0 : index
    %39 = vector.load %arg7[%c0_21, %c0_22] : memref<32x32xf32, #tpu.memory_space<vmem>>, vector<32x32xf32>
    %cst_23 = arith.constant dense<0.000000e+00> : vector<16x32xf32>
    %40 = tpu.matmul %38, %39, %cst_23 {dimension_numbers = #tpu.dot_dimension_numbers<[1], [0], [0], [1], [0, 0, 1, 1], [], []>} : vector<16x32xf32>, vector<32x32xf32>, vector<16x32xf32> -> vector<16x32xf32>
    %41 = arith.addf %1, %40 : vector<16x32xf32>
    %c0_24 = arith.constant 0 : index
    %c0_25 = arith.constant 0 : index
    %42 = vector.load %arg8[%c0_24, %c0_25] : memref<1x32xf32, #tpu.memory_space<vmem>>, vector<1x32xf32>
    %c0_26 = arith.constant 0 : index
    %c0_27 = arith.constant 0 : index
    %43 = vector.load %arg9[%c0_26, %c0_27] : memref<1x32xf32, #tpu.memory_space<vmem>>, vector<1x32xf32>
    %cst_28 = arith.constant dense<0.000000e+00> : vector<16xf32>
    %44 = vector.multi_reduction <add>, %41, %cst_28 [1] : vector<16x32xf32> to vector<16xf32>
    %45 = vector.shape_cast %44 : vector<16xf32> to vector<16x1xf32>
    %cst_29 = arith.constant 3.200000e+01 : f32
    %46 = vector.broadcast %cst_29 : f32 to vector<16x1xf32>
    %47 = arith.divf %45, %46 : vector<16x1xf32>
    %48 = vector.broadcast %47 : vector<16x1xf32> to vector<16x32xf32>
    %49 = arith.subf %41, %48 : vector<16x32xf32>
    %50 = arith.mulf %49, %49 : vector<16x32xf32>
    %cst_30 = arith.constant dense<0.000000e+00> : vector<16xf32>
    %51 = vector.multi_reduction <add>, %50, %cst_30 [1] : vector<16x32xf32> to vector<16xf32>
    %52 = vector.shape_cast %51 : vector<16xf32> to vector<16x1xf32>
    %cst_31 = arith.constant 3.200000e+01 : f32
    %53 = vector.broadcast %cst_31 : f32 to vector<16x1xf32>
    %54 = arith.divf %52, %53 : vector<16x1xf32>
    %55 = vector.broadcast %47 : vector<16x1xf32> to vector<16x32xf32>
    %56 = arith.subf %41, %55 : vector<16x32xf32>
    %cst_32 = arith.constant 9.99999997E-7 : f32
    %57 = vector.broadcast %cst_32 : f32 to vector<16x1xf32>
    %58 = arith.addf %54, %57 : vector<16x1xf32>
    %59 = math.rsqrt %58 : vector<16x1xf32>
    %60 = vector.broadcast %59 : vector<16x1xf32> to vector<16x32xf32>
    %61 = arith.mulf %56, %60 : vector<16x32xf32>
    %62 = vector.broadcast %42 : vector<1x32xf32> to vector<16x32xf32>
    %63 = arith.mulf %61, %62 : vector<16x32xf32>
    %64 = vector.broadcast %43 : vector<1x32xf32> to vector<16x32xf32>
    %65 = arith.addf %63, %64 : vector<16x32xf32>
    %c0_33 = arith.constant 0 : index
    %c0_34 = arith.constant 0 : index
    %66 = vector.load %arg10[%c0_33, %c0_34] : memref<32x128xf32, #tpu.memory_space<vmem>>, vector<32x128xf32>
    %cst_35 = arith.constant dense<0.000000e+00> : vector<16x128xf32>
    %67 = tpu.matmul %65, %66, %cst_35 {dimension_numbers = #tpu.dot_dimension_numbers<[1], [0], [0], [1], [0, 0, 1, 1], [], []>} : vector<16x32xf32>, vector<32x128xf32>, vector<16x128xf32> -> vector<16x128xf32>
    %c0_36 = arith.constant 0 : index
    %c0_37 = arith.constant 0 : index
    %68 = vector.load %arg11[%c0_36, %c0_37] : memref<1x128xf32, #tpu.memory_space<vmem>>, vector<1x128xf32>
    %69 = vector.broadcast %68 : vector<1x128xf32> to vector<16x128xf32>
    %70 = arith.addf %67, %69 : vector<16x128xf32>
    %cst_38 = arith.constant 0.000000e+00 : f32
    %71 = vector.broadcast %cst_38 : f32 to vector<16x128xf32>
    %72 = arith.cmpf ogt, %70, %71 : vector<16x128xf32>
    %cst_39 = arith.constant 2.000000e-01 : f32
    %73 = vector.broadcast %cst_39 : f32 to vector<16x128xf32>
    %74 = arith.mulf %73, %70 : vector<16x128xf32>
    %75 = arith.select %72, %70, %74 : vector<16x128xi1>, vector<16x128xf32>
    %c0_40 = arith.constant 0 : index
    %c0_41 = arith.constant 0 : index
    %76 = vector.load %arg12[%c0_40, %c0_41] : memref<128x32xf32, #tpu.memory_space<vmem>>, vector<128x32xf32>
    %cst_42 = arith.constant dense<0.000000e+00> : vector<16x32xf32>
    %77 = tpu.matmul %75, %76, %cst_42 {dimension_numbers = #tpu.dot_dimension_numbers<[1], [0], [0], [1], [0, 0, 1, 1], [], []>} : vector<16x128xf32>, vector<128x32xf32>, vector<16x32xf32> -> vector<16x32xf32>
    %c0_43 = arith.constant 0 : index
    %c0_44 = arith.constant 0 : index
    %78 = vector.load %arg13[%c0_43, %c0_44] : memref<1x32xf32, #tpu.memory_space<vmem>>, vector<1x32xf32>
    %79 = vector.broadcast %78 : vector<1x32xf32> to vector<16x32xf32>
    %80 = arith.addf %77, %79 : vector<16x32xf32>
    %81 = arith.addf %65, %80 : vector<16x32xf32>
    %c0_45 = arith.constant 0 : index
    %c0_46 = arith.constant 0 : index
    %82 = vector.load %arg14[%c0_45, %c0_46] : memref<1x32xf32, #tpu.memory_space<vmem>>, vector<1x32xf32>
    %c0_47 = arith.constant 0 : index
    %c0_48 = arith.constant 0 : index
    %83 = vector.load %arg15[%c0_47, %c0_48] : memref<1x32xf32, #tpu.memory_space<vmem>>, vector<1x32xf32>
    %cst_49 = arith.constant dense<0.000000e+00> : vector<16xf32>
    %84 = vector.multi_reduction <add>, %81, %cst_49 [1] : vector<16x32xf32> to vector<16xf32>
    %85 = vector.shape_cast %84 : vector<16xf32> to vector<16x1xf32>
    %cst_50 = arith.constant 3.200000e+01 : f32
    %86 = vector.broadcast %cst_50 : f32 to vector<16x1xf32>
    %87 = arith.divf %85, %86 : vector<16x1xf32>
    %88 = vector.broadcast %87 : vector<16x1xf32> to vector<16x32xf32>
    %89 = arith.subf %81, %88 : vector<16x32xf32>
    %90 = arith.mulf %89, %89 : vector<16x32xf32>
    %cst_51 = arith.constant dense<0.000000e+00> : vector<16xf32>
    %91 = vector.multi_reduction <add>, %90, %cst_51 [1] : vector<16x32xf32> to vector<16xf32>
    %92 = vector.shape_cast %91 : vector<16xf32> to vector<16x1xf32>
    %cst_52 = arith.constant 3.200000e+01 : f32
    %93 = vector.broadcast %cst_52 : f32 to vector<16x1xf32>
    %94 = arith.divf %92, %93 : vector<16x1xf32>
    %95 = vector.broadcast %87 : vector<16x1xf32> to vector<16x32xf32>
    %96 = arith.subf %81, %95 : vector<16x32xf32>
    %cst_53 = arith.constant 9.99999997E-7 : f32
    %97 = vector.broadcast %cst_53 : f32 to vector<16x1xf32>
    %98 = arith.addf %94, %97 : vector<16x1xf32>
    %99 = math.rsqrt %98 : vector<16x1xf32>
    %100 = vector.broadcast %99 : vector<16x1xf32> to vector<16x32xf32>
    %101 = arith.mulf %96, %100 : vector<16x32xf32>
    %102 = vector.broadcast %82 : vector<1x32xf32> to vector<16x32xf32>
    %103 = arith.mulf %101, %102 : vector<16x32xf32>
    %104 = vector.broadcast %83 : vector<1x32xf32> to vector<16x32xf32>
    %105 = arith.addf %103, %104 : vector<16x32xf32>
    %106 = vector.shape_cast %105 : vector<16x32xf32> to vector<2x8x32xf32>
    %c0_54 = arith.constant 0 : index
    %c0_55 = arith.constant 0 : index
    %c0_56 = arith.constant 0 : index
    %107 = vector.load %arg16[%c0_54, %c0_55, %c0_56] : memref<2x8x32xf32, #tpu.memory_space<vmem>>, vector<2x8x32xf32>
    tpu.vector_store %arg16[%c0_54, %c0_55, %c0_56], %106 {strides = array<i32>} : memref<2x8x32xf32, #tpu.memory_space<vmem>>, vector<2x8x32xf32>,
    return
  }
  func.func @transform_0(%arg0: i32) -> (i32, i32, i32) {
    %c0_i32 = arith.constant 0 : i32
    %c0_i32_0 = arith.constant 0 : i32
    %c0_i32_1 = arith.constant 0 : i32
    return %arg0, %c0_i32, %c0_i32_0 : i32, i32, i32
  }
  func.func @transform_1(%arg0: i32) -> (i32, i32, i32) {
    %c0_i32 = arith.constant 0 : i32
    %c0_i32_0 = arith.constant 0 : i32
    %c0_i32_1 = arith.constant 0 : i32
    return %arg0, %c0_i32, %c0_i32_0 : i32, i32, i32
  }
  func.func @transform_2(%arg0: i32) -> (i32, i32, i32) {
    %c0_i32 = arith.constant 0 : i32
    %c0_i32_0 = arith.constant 0 : i32
    %c0_i32_1 = arith.constant 0 : i32
    return %arg0, %c0_i32, %c0_i32_0 : i32, i32, i32
  }
  func.func @transform_3(%arg0: i32) -> (i32, i32) {
    %c0_i32 = arith.constant 0 : i32
    %c0_i32_0 = arith.constant 0 : i32
    %c0_i32_1 = arith.constant 0 : i32
    return %c0_i32, %c0_i32_0 : i32, i32
  }
  func.func @transform_4(%arg0: i32) -> (i32, i32) {
    %c0_i32 = arith.constant 0 : i32
    %c0_i32_0 = arith.constant 0 : i32
    %c0_i32_1 = arith.constant 0 : i32
    return %c0_i32, %c0_i32_0 : i32, i32
  }
  func.func @transform_5(%arg0: i32) -> (i32, i32) {
    %c0_i32 = arith.constant 0 : i32
    %c0_i32_0 = arith.constant 0 : i32
    %c0_i32_1 = arith.constant 0 : i32
    return %c0_i32, %c0_i32_0 : i32, i32
  }
  func.func @transform_6(%arg0: i32) -> (i32, i32) {
    %c0_i32 = arith.constant 0 : i32
    %c0_i32_0 = arith.constant 0 : i32
    %c0_i32_1 = arith.constant 0 : i32
    return %c0_i32, %c0_i32_0 : i32, i32
  }
  func.func @transform_7(%arg0: i32) -> (i32, i32) {
    %c0_i32 = arith.constant 0 : i32
    %c0_i32_0 = arith.constant 0 : i32
    %c0_i32_1 = arith.constant 0 : i32
    return %c0_i32, %c0_i32_0 : i32, i32
  }
  func.func @transform_8(%arg0: i32) -> (i32, i32) {
    %c0_i32 = arith.constant 0 : i32
    %c0_i32_0 = arith.constant 0 : i32
    %c0_i32_1 = arith.constant 0 : i32
    return %c0_i32, %c0_i32_0 : i32, i32
  }
  func.func @transform_9(%arg0: i32) -> (i32, i32) {
    %c0_i32 = arith.constant 0 : i32
    %c0_i32_0 = arith.constant 0 : i32
    %c0_i32_1 = arith.constant 0 : i32
    return %c0_i32, %c0_i32_0 : i32, i32
  }
  func.func @transform_10(%arg0: i32) -> (i32, i32) {
    %c0_i32 = arith.constant 0 : i32
    %c0_i32_0 = arith.constant 0 : i32
    %c0_i32_1 = arith.constant 0 : i32
    return %c0_i32, %c0_i32_0 : i32, i32
  }
  func.func @transform_11(%arg0: i32) -> (i32, i32) {
    %c0_i32 = arith.constant 0 : i32
    %c0_i32_0 = arith.constant 0 : i32
    %c0_i32_1 = arith.constant 0 : i32
    return %c0_i32, %c0_i32_0 : i32, i32
  }
  func.func @transform_12(%arg0: i32) -> (i32, i32) {
    %c0_i32 = arith.constant 0 : i32
    %c0_i32_0 = arith.constant 0 : i32
    %c0_i32_1 = arith.constant 0 : i32
    return %c0_i32, %c0_i32_0 : i32, i32
  }
  func.func @transform_13(%arg0: i32) -> (i32, i32) {
    %c0_i32 = arith.constant 0 : i32
    %c0_i32_0 = arith.constant 0 : i32
    %c0_i32_1 = arith.constant 0 : i32
    return %c0_i32, %c0_i32_0 : i32, i32
  }
  func.func @transform_14(%arg0: i32) -> (i32, i32) {
    %c0_i32 = arith.constant 0 : i32
    %c0_i32_0 = arith.constant 0 : i32
    %c0_i32_1 = arith.constant 0 : i32
    return %c0_i32, %c0_i32_0 : i32, i32
  }
  func.func @transform_15(%arg0: i32) -> (i32, i32, i32) {
    %c0_i32 = arith.constant 0 : i32
    %c0_i32_0 = arith.constant 0 : i32
    %c0_i32_1 = arith.constant 0 : i32
    return %arg0, %c0_i32, %c0_i32_0 : i32, i32, i32
  }
}

</mosaic_0001>

<bundles_post_ra>
// kernel: tpu_custom_call.1
= control target key start
LH: loop header
LB: loop body
LE: loop exit
PB: predicated region body
PF: predicated region fallthrough
CT: control target
= control target key end

     0   :  { %vm61_vm0 = vcmask 261120   ;;  %s2071_s18 = smov 32   ;;  %s2780_s0 = inlined_call_operand.vmem [shape: f32[2,8,32], index: 0, kind: input, shape index: {}]   ;;  %s2781_s1 = inlined_call_operand.vmem [shape: f32[2,16,32], index: 1, kind: input, shape index: {}]   ;;  %s2782_s2 = inlined_call_operand.vmem [shape: s8[2,8,16], index: 2, kind: input, shape index: {}]   ;;  %s2783_s3 = inlined_call_operand.vmem [shape: f32[128,32], index: 3, kind: input, shape index: {}]   ;;  %s2784_s4 = inlined_call_operand.vmem [shape: f32[32,32], index: 4, kind: input, shape index: {}]   ;;  %s2785_s5 = inlined_call_operand.vmem [shape: f32[32,64], index: 5, kind: input, shape index: {}]   ;;  %s2786_s6 = inlined_call_operand.vmem [shape: f32[32,32], index: 6, kind: input, shape index: {}]   ;;  %s2787_s7 = inlined_call_operand.vmem [shape: f32[1,32], index: 7, kind: input, shape index: {}]   ;;  %s2788_s8 = inlined_call_operand.vmem [shape: f32[1,32], index: 8, kind: input, shape index: {}]   ;;  %s2789_s9 = inlined_call_operand.vmem [shape: f32[32,128], index: 9, kind: input, shape index: {}]   ;;  %s2790_s10 = inlined_call_operand.vmem [shape: f32[1,128], index: 10, kind: input, shape index: {}]   ;;  %s2791_s11 = inlined_call_operand.vmem [shape: f32[128,32], index: 11, kind: input, shape index: {}]   ;;  %s2792_s12 = inlined_call_operand.vmem [shape: f32[1,32], index: 12, kind: input, shape index: {}]   ;;  %s2793_s13 = inlined_call_operand.vmem [shape: f32[1,32], index: 13, kind: input, shape index: {}]   ;;  %s2794_s14 = inlined_call_operand.vmem [shape: f32[1,32], index: 14, kind: input, shape index: {}]   ;;  %s2795_s15 = inlined_call_operand.hbm [shape: f32[2,8,32], index: 15, kind: output, shape index: {}]  }
   0x1   :  { %v57_v0 = vld [vmem:[%s2784_s4] sm:$0xff]  ;;  %v58_v1 = vld [vmem:[%s2784_s4 + $0x8] sm:$0xff]  ;;  %v59_v2 = vld [vmem:[%s2784_s4 + $0x10] sm:$0xff] }
   0x2   :  { %v1766_v3 = vpack.c.bf16 %v58_v1, %v57_v0  ;;  %v60_v4 = vld [vmem:[%s2784_s4 + $0x18] sm:$0xff]  ;;  %v2179_v5 = vld [vmem:[%s2780_s0] sm:$0xff]  ;;  %v144_v8 = vld [vmem:[%s2785_s5 + $0x8] sm:$0xff] }
   0x3   :  { %v1770_v6 = vpack.c.bf16 %v60_v4, %v59_v2  ;;  %1552 = vmatprep.mubr.msk.f32.mxu1 %vm61_vm0, %v2179_v5  ;;  %v143_v7 = vld [vmem:[%s2785_s5] sm:$0xff]  ;;  %v2192_v9 = vld [vmem:[%s2783_s3 + $0x10] sm:$0xff]  ;;  %v146_v13 = vld [vmem:[%s2785_s5 + $0x18] sm:$0xff] }
   0x4   :  { %1767 = vmatprep.subr.bf16.mxu1 %v1766_v3  ;;  %v1774_v10 = vpack.c.bf16 %v144_v8, %v143_v7  ;;  %331 = vrot.lane.b32.xlu1 %v2192_v9, %s2071_s18  ;;  %v2199_v11 = vld [vmem:[%s2783_s3] sm:$0xff]  ;;  %v145_v12 = vld [vmem:[%s2785_s5 + $0x10] sm:$0xff]  ;;  %v2212_v14 = vld [vmem:[%s2783_s3 + $0x18] sm:$0xff] }
   0x5   :  { %1769 = vmatpush3.bf16.msra.mxu1 %v1766_v3  ;;  %327 = vrot.lane.b32.xlu0 %v2199_v11, %s2071_s18  ;;  %v2217_v15 = vld [vmem:[%s2783_s3 + $0x8] sm:$0xff]  ;;  %v1778_v17 = vpack.c.bf16 %v146_v13, %v145_v12  ;;  %v53_v18 = vld [vmem:[%s2781_s1] sm:$0xff] }
   0x6   :  { %1771 = vmatprep.subr.bf16.mxu1 %v1770_v6  ;;  %v2222_v16 = vld [vmem:[%s2780_s0 + $0x8] sm:$0xff] }
   0x7   :  { %2801 = vst [vmem:[#allocation5_spill] sm:$0xff] %v2222_v16  ;;  %v2234_v19 = vld [vmem:[%s2783_s3 + $0x28] sm:$0xff] }
   0x8   :  { %333 = vrot.lane.b32.xlu1 %v2212_v14, %s2071_s18 }
   0x9   :  { %1773 = vmatpush3.bf16.msra.mxu1 %v1770_v6  ;;  %329 = vrot.lane.b32.xlu0 %v2217_v15, %s2071_s18 }
   0xa   :  { %1775 = vmatprep.subr.bf16.mxu1 %v1774_v10 }
   0xb   :  { %20 = vsyncpa [#allocation3], 0  ;;  %v2241_v20 = vld [vmem:[%s2783_s3 + $0x20] sm:$0xff]  ;;  %v2251_v21 = vld [vmem:[%s2783_s3 + $0x38] sm:$0xff]  ;;  %s2074_s30 = smov 64   ;;  %s2075_s5 = smov 80  }
   0xc   :  { %1553 = vmatmul.mubr.msk.f32.vlgmr.msra.gmra.mrb[0].mxu1 %vm61_vm0, %v2222_v16  ;;  %337 = vrot.lane.b32.xlu1 %v2234_v19, %s2071_s18  ;;  %v2256_v22 = vld [vmem:[%s2783_s3 + $0x30] sm:$0xff]  ;;  %v54_v23 = vld [vmem:[%s2781_s1 + $0x8] sm:$0xff]  ;;  %v2277_v26 = vld [vmem:[%s2783_s3 + $0x40] sm:$0xff]  ;;  %v2798_v39 = vmov 0.0|0.0   ;;  %vm2077_vm1 = vmmov 0   ;;  %v2796_v54 = vmov 0.0  }
   0xd   :  { %1777 = vmatpush3.bf16.msra.mxu1 %v1774_v10  ;;  %1563 = vmatprep.mubr.msk.f32.mxu1 %vm61_vm0, %v53_v18  ;;  %v55_v24 = vld [vmem:[%s2781_s1 + $0x10] sm:$0xff]  ;;  %v2271_v25 = vld [vmem:[%s2783_s3 + $0x48] sm:$0xff]  ;;  %v56_v27 = vld [vmem:[%s2781_s1 + $0x18] sm:$0xff]  ;;  %vm250_vm2 = vcmask 130048   ;;  %vm697_vm3 = vcmask 392192   ;;  %vm700_vm4 = vcmask 523264  }
   0xe   :  { %1779 = vmatprep.subr.bf16.mxu1 %v1778_v17  ;;  %335 = vrot.lane.b32.xlu0 %v2241_v20, %s2071_s18  ;;  %v2290_v28 = vld [vmem:[%s2783_s3 + $0x58] sm:$0xff]  ;;  %v2296_v29 = vld [vmem:[%s2783_s3 + $0x50] sm:$0xff]  ;;  %v2305_v30 = vld [vmem:[%s2783_s3 + $0x68] sm:$0xff]  ;;  %vm703_vm5 = vcmask 654336   ;;  %s2080_s16 = smov 112   ;;  %vm706_vm7 = vcmask 785408  }
   0xf   :  { %v2310_v31 = vld [vmem:[%s2783_s3 + $0x60] sm:$0xff]  ;;  %v2322_v33 = vld [vmem:[%s2783_s3 + $0x78] sm:$0xff]  ;;  %v2327_v35 = vld [vmem:[%s2783_s3 + $0x70] sm:$0xff]  ;;  %s2073_s3 = smov 48   ;;  %1782 = vmatprep.subr.bf16.mxu0 %v2798_v39  ;;  %1601 = vmatprep.mubr.msk.f32.mxu0 %vm2077_vm1, %v2796_v54  ;;  %vm709_vm8 = vcmask 916480   ;;  %s2081_s23 = smov [#allocation2]  }
  0x10   :  { %341 = vrot.lane.b32.xlu1 %v2251_v21, %s2071_s18  ;;  %v1429_v32 = vld [vmem:[%s2782_s2] sm:$0xf]   ;;  %s2072_s2 = smov 16   ;;  %vm2435_vm6 = vmpackc.low %vm61_vm0, %vm61_vm0  ;;  %s1367_s24 = sshll.u32 %s2081_s23, 4  ;;  %s1368_s24 = int_to_ptr.vmem [resolvable:$true] %s1367_s24 }
  0x11   :  { %1781 = vmatpush3.bf16.msra.mxu1 %v1778_v17  ;;  %v1430_v34 = vunpack.c.0.s8 %v1429_v32  ;;  %v1431_v37 = vunpack.c.1.s8 %v1429_v32  ;;  %s2047_s25 = scalar_lea.vmem %s1368_s24, 256  ;;  %p2052_p1 = scmp.lt.s32.totalorder %s1368_s24, %s1368_s24 }
  0x12   :  { %339 = vrot.lane.b32.xlu0 %v2256_v22, %s2071_s18  ;;  %1814 = vmatprep.subr.bf16.mxu1 %v2798_v39  ;;  %p2048_p0 = scmp.ne.s32.totalorder %s1368_s24, %s2047_s25  ;;  %p2053_p2 = scmp.lt.s32.totalorder %s2047_s25, %s2047_s25 }
  0x13   :  { %v2333_v36 = vcvt.s32.f32 %v1430_v34  ;;  %v2338_v38 = vcvt.s32.f32 %v1431_v37 }
  0x14   :  { %1564 = vmatmul.mubr.msk.f32.vlgmr.msra.gmra.mrb[2].mxu1 %vm61_vm0, %v54_v23  ;;  %345 = vrot.lane.b32.xlu1 %v2271_v25, %s2071_s18  ;;  %p2054_p3 = por %p2053_p2, %p2052_p1 }
  0x15   :  { %1566 = vmatprep.mubr.msk.f32.mxu1 %vm61_vm0, %v55_v24 }
  0x16   :  { %343 = vrot.lane.b32.xlu0 %v2277_v26, %s2071_s18  ;;  %p2055_p4 = pnand %p2054_p3, %p2048_p0 }
  0x18   :  { %1567 = vmatmul.mubr.msk.f32.gmra.mrb[4].mxu1 %vm61_vm0, %v56_v27  ;;  %349 = vrot.lane.b32.xlu1 %v2290_v28, %s2071_s18 }
  0x19   :  { %1636 = vmatprep.mubr.msk.f32.mxu1 %vm2077_vm1, %v2796_v54 }
  0x1a   :  { %347 = vrot.lane.b32.xlu0 %v2296_v29, %s2071_s18 }
  0x1c   :  { %353 = vrot.lane.b32.xlu1 %v2305_v30, %s2071_s18 }
  0x1e   :  { %351 = vrot.lane.b32.xlu0 %v2310_v31, %s2071_s18 }
  0x20   :  { %357 = vrot.lane.b32.xlu1 %v2322_v33, %s2071_s18 }
  0x22   :  { %355 = vrot.lane.b32.xlu0 %v2327_v35, %s2071_s18 }
  0x24   :  { %657 = vrot.lane.b32.xlu1 %v2333_v36, %s2071_s18 }
  0x26   :  { %651 = vrot.lane.b32.xlu0 %v2333_v36, %s2072_s2 }
  0x28   :  { %659 = vrot.lane.b32.xlu1 %v2338_v38, %s2071_s18  ;;  %s2079_s18 = smov 96  }
  0x2a   :  { %653 = vrot.lane.b32.xlu0 %v2338_v38, %s2072_s2 }
  0x2c   :  { %665 = vrot.lane.b32.xlu1 %v2338_v38, %s2073_s3 }
  0x2e   :  { %663 = vrot.lane.b32.xlu0 %v2333_v36, %s2073_s3 }
  0x30   :  { %671 = vrot.lane.b32.xlu1 %v2338_v38, %s2074_s30 }
  0x32   :  { %669 = vrot.lane.b32.xlu0 %v2333_v36, %s2074_s30 }
  0x36   :  { %675 = vrot.lane.b32.xlu0 %v2333_v36, %s2075_s5 }
  0x3a   :  { %677 = vrot.lane.b32.xlu0 %v2338_v38, %s2075_s5 }
  0x76   :  { %v2351_v40 = vpop.permute.xlu1 %331 }
  0x77   :  { %v2353_v41 = vpop.permute.xlu0 %327 }
  0x7a   :  { %v2355_v42 = vpop.permute.xlu1 %333 }
  0x7b   :  { %v2357_v43 = vpop.permute.xlu0 %329 }
  0x7e   :  { %v2359_v44 = vpop.permute.xlu1 %337 }
  0x80   :  { %v2361_v45 = vpop.permute.xlu0 %335 }
  0x82   :  { %v2363_v46 = vpop.permute.xlu1 %341 }
  0x84   :  { %v2365_v47 = vpop.permute.xlu0 %339 }
  0x86   :  { %v2367_v48 = vpop.permute.xlu1 %345 }
  0x88   :  { %v2369_v49 = vpop.permute.xlu0 %343 }
  0x8a   :  { %v2371_v50 = vpop.permute.xlu1 %349 }
  0x8c   :  { %v2373_v51 = vpop.permute.xlu0 %347 }
  0x8e   :  { %v2375_v52 = vpop.permute.xlu1 %353 }
  0x90   :  { %v2377_v53 = vpop.permute.xlu0 %351 }
  0x92   :  { %v2383_v55 = vpop.permute.xlu1 %357 }
  0x94   :  { %v2385_v56 = vpop.permute.xlu0 %355 }
  0x96   :  { %v658_v58 = vpop.permute.xlu1 %657 }
  0x98   :  { %v652_v57 = vpop.permute.xlu0 %651 }
  0x99   :  { %v693_v59 = vsel %vm250_vm2, %v2333_v36, %v652_v57 }
  0x9a   :  { %v695_v60 = vsel %vm61_vm0, %v693_v59, %v658_v58  ;;  %v660_v62 = vpop.permute.xlu1 %659 }
  0x9c   :  { %v654_v61 = vpop.permute.xlu0 %653 }
  0x9d   :  { %v694_v63 = vsel %vm250_vm2, %v2338_v38, %v654_v61 }
  0x9e   :  { %v696_v0 = vsel %vm61_vm0, %v694_v63, %v660_v62  ;;  %v666_v2 = vpop.permute.xlu1 %665 }
  0x9f   :  { %v2393_v4 = vsel %vm697_vm3, %v696_v0, %v666_v2 }
  0xa0   :  { %v664_v1 = vpop.permute.xlu0 %663 }
  0xa1   :  { %v698_v3 = vsel %vm697_vm3, %v695_v60, %v664_v1 }
  0xa4   :  { %v670_v6 = vpop.permute.xlu0 %669 }
  0xa5   :  { %v701_v7 = vsel %vm700_vm4, %v698_v3, %v670_v6 }
  0xa8   :  { %v676_v8 = vpop.permute.xlu0 %675 }
  0xa9   :  { %v2397_v10 = vsel %vm703_vm5, %v701_v7, %v676_v8 }
  0xdf   :  { %v2399_v12 = vpop.f32.mrb[0].mxu1 }
  0xe0   :  { %v2401_v13 = vpop.f32.mrb[1].mxu1 }
  0xe7   :  { %v2403_v17 = vpop.f32.mrb[2].mxu1 }
  0xe8   :  { %v2405_v18 = vpop.f32.mrb[3].mxu1  ;;  %v388_v23 = vmul.f32 %v2403_v17, %v2375_v52  ;;  %v376_v24 = vmul.f32 %v2403_v17, %v2357_v43  ;;  %v280_v27 = vmul.f32 %v2403_v17, %v2217_v15  ;;  %v390_v32 = vmul.f32 %v2403_v17, %v2383_v55 }
  0xe9   :  { %v387_v34 = vmul.f32 %v2377_v53, %v2405_v18  ;;  %v375_v37 = vmul.f32 %v2353_v41, %v2405_v18  ;;  %v279_v57 = vmul.f32 %v2199_v11, %v2405_v18  ;;  %v389_v58 = vmul.f32 %v2385_v56, %v2405_v18 }
  0xea   :  { %v377_v59 = vmul.f32 %v2351_v40, %v2405_v18  ;;  %v378_v60 = vmul.f32 %v2403_v17, %v2355_v42  ;;  %v379_v61 = vmul.f32 %v2361_v45, %v2405_v18  ;;  %v380_v62 = vmul.f32 %v2403_v17, %v2359_v44 }
  0xeb   :  { %v2431_v63 = vpop.f32.mrb[4].mxu1  ;;  %v1985_v0 = vpack.i.bf16 %v388_v23, %v387_v34  ;;  %v1955_v1 = vpack.i.bf16 %v376_v24, %v375_v37  ;;  %v1783_v2 = vpack.c.bf16 %v280_v27, %v279_v57  ;;  %v1990_v6 = vpack.i.bf16 %v390_v32, %v389_v58 }
  0xec   :  { %v2439_v7 = vpop.f32.mrb[5].mxu1  ;;  %v1960_v8 = vpack.i.bf16 %v378_v60, %v377_v59  ;;  %v296_v54 = vmul.f32 %v2431_v63, %v2217_v15  ;;  %v1965_v39 = vpack.i.bf16 %v380_v62, %v379_v61  ;;  %v281_v16 = vmul.f32 %v2192_v9, %v2405_v18 }
  0xed   :  { %1986 = vrot.lane.b32.xlu1 %v1985_v0, %s2079_s18  ;;  %1956 = vrot.lane.b32.xlu0 %v1955_v1, %s2079_s18  ;;  %v295_v23 = vmul.f32 %v2199_v11, %v2439_v7  ;;  %v282_v24 = vmul.f32 %v2403_v17, %v2212_v14  ;;  %v391_v27 = vmul.f32 %v2353_v41, %v2439_v7  ;;  %v2804_v57 = vmov 0.0|0.0  }
  0xee   :  { %1785 = vmatpush3.bf16.xpose.msk.msra.mxu0 %vm2435_vm6, %v1783_v2  ;;  %v392_v15 = vmul.f32 %v2431_v63, %v2357_v43  ;;  %v381_v32 = vmul.f32 %v2365_v47, %v2405_v18  ;;  %v382_v34 = vmul.f32 %v2403_v17, %v2363_v46  ;;  %v393_v11 = vmul.f32 %v2351_v40, %v2439_v7 }
  0xef   :  { %v1815_v37 = vpack.c.bf16 %v296_v54, %v295_v23  ;;  %1786 = vmatprep.subr.bf16.mxu0 %v2804_v57  ;;  %v1787_v58 = vpack.c.bf16 %v282_v24, %v281_v16  ;;  %v394_v41 = vmul.f32 %v2431_v63, %v2355_v42  ;;  %v297_v59 = vmul.f32 %v2192_v9, %v2439_v7 }
  0xf0   :  { %v1995_v43 = vpack.i.bf16 %v392_v15, %v391_v27  ;;  %v1970_v60 = vpack.i.bf16 %v382_v34, %v381_v32  ;;  %v298_v61 = vmul.f32 %v2431_v63, %v2212_v14  ;;  %v383_v62 = vmul.f32 %v2369_v49, %v2405_v18 }
  0xf1   :  { %1991 = vrot.lane.b32.xlu1 %v1990_v6, %s2079_s18  ;;  %1961 = vrot.lane.b32.xlu0 %v1960_v8, %s2079_s18  ;;  %v2000_v40 = vpack.i.bf16 %v394_v41, %v393_v11  ;;  %v384_v16 = vmul.f32 %v2403_v17, %v2367_v48  ;;  %v283_v42 = vmul.f32 %v2241_v20, %v2405_v18 }
  0xf2   :  { %1817 = vmatpush3.bf16.xpose.msk.msra.mxu1 %vm2435_vm6, %v1815_v37  ;;  %v1819_v9 = vpack.c.bf16 %v298_v61, %v297_v59  ;;  %v284_v14 = vmul.f32 %v2403_v17, %v2234_v19  ;;  %v395_v54 = vmul.f32 %v2361_v45, %v2439_v7  ;;  %v396_v0 = vmul.f32 %v2431_v63, %v2359_v44 }
  0xf3   :  { %1818 = vmatprep.subr.bf16.mxu1 %v2804_v57  ;;  %v1975_v1 = vpack.i.bf16 %v384_v16, %v383_v62  ;;  %v2489_v2 = vmul.f32 %v2373_v51, %v2405_v18  ;;  %v386_v6 = vmul.f32 %v2403_v17, %v2371_v50  ;;  %v397_v8 = vmul.f32 %v2365_v47, %v2439_v7 }
  0xf4   :  { %v1791_v23 = vpack.c.bf16 %v284_v14, %v283_v42  ;;  %v2005_v24 = vpack.i.bf16 %v396_v0, %v395_v54  ;;  %v398_v45 = vmul.f32 %v2431_v63, %v2363_v46  ;;  %v299_v44 = vmul.f32 %v2241_v20, %v2439_v7 }
  0xf5   :  { %1966 = vrot.lane.b32.xlu0 %v1965_v39, %s2079_s18  ;;  %1996 = vrot.lane.b32.xlu1 %v1995_v43, %s2079_s18  ;;  %v1980_v27 = vpack.i.bf16 %v386_v6, %v2489_v2  ;;  %v300_v15 = vmul.f32 %v2431_v63, %v2234_v19  ;;  %v285_v47 = vmul.f32 %v2256_v22, %v2405_v18 }
  0xf6   :  { %1789 = vmatpush3.bf16.xpose.msk.msra.mxu0 %vm2435_vm6, %v1787_v58  ;;  %v2010_v32 = vpack.i.bf16 %v398_v45, %v397_v8  ;;  %v286_v46 = vmul.f32 %v2403_v17, %v2251_v21  ;;  %v403_v20 = vmul.f32 %v2377_v53, %v2439_v7  ;;  %v404_v39 = vmul.f32 %v2431_v63, %v2375_v52 }
  0xf7   :  { %1790 = vmatprep.subr.bf16.mxu0 %v2804_v57  ;;  %v1823_v34 = vpack.c.bf16 %v300_v15, %v299_v44  ;;  %v399_v19 = vmul.f32 %v2369_v49, %v2439_v7  ;;  %v400_v11 = vmul.f32 %v2431_v63, %v2367_v48  ;;  %v405_v37 = vmul.f32 %v2385_v56, %v2439_v7 }
  0xf8   :  { %v1795_v58 = vpack.c.bf16 %v286_v46, %v285_v47  ;;  %v2025_v41 = vpack.i.bf16 %v404_v39, %v403_v20  ;;  %v406_v53 = vmul.f32 %v2431_v63, %v2383_v55  ;;  %v401_v52 = vmul.f32 %v2373_v51, %v2439_v7 }
  0xf9   :  { %1971 = vrot.lane.b32.xlu0 %v1970_v60, %s2079_s18  ;;  %2001 = vrot.lane.b32.xlu1 %v2000_v40, %s2079_s18  ;;  %v2015_v59 = vpack.i.bf16 %v400_v11, %v399_v19  ;;  %v402_v49 = vmul.f32 %v2431_v63, %v2371_v50  ;;  %v301_v48 = vmul.f32 %v2256_v22, %v2439_v7 }
  0xfa   :  { %1821 = vmatpush3.bf16.xpose.msk.msra.mxu1 %vm2435_vm6, %v1819_v9  ;;  %v2030_v56 = vpack.i.bf16 %v406_v53, %v405_v37  ;;  %v302_v55 = vmul.f32 %v2431_v63, %v2251_v21  ;;  %v287_v51 = vmul.f32 %v2277_v26, %v2405_v18  ;;  %v288_v43 = vmul.f32 %v2403_v17, %v2271_v25 }
  0xfb   :  { %1822 = vmatprep.subr.bf16.mxu1 %v2804_v57  ;;  %v2020_v60 = vpack.i.bf16 %v402_v49, %v401_v52  ;;  %v303_v50 = vmul.f32 %v2277_v26, %v2439_v7  ;;  %v304_v22 = vmul.f32 %v2431_v63, %v2271_v25  ;;  %v289_v61 = vmul.f32 %v2296_v29, %v2405_v18 }
  0xfc   :  { %v1827_v62 = vpack.c.bf16 %v302_v55, %v301_v48  ;;  %v1799_v21 = vpack.c.bf16 %v288_v43, %v287_v51  ;;  %v290_v40 = vmul.f32 %v2403_v17, %v2290_v28  ;;  %v305_v16 = vmul.f32 %v2296_v29, %v2439_v7 }
  0xfd   :  { %1976 = vrot.lane.b32.xlu0 %v1975_v1, %s2079_s18  ;;  %2006 = vrot.lane.b32.xlu1 %v2005_v24, %s2079_s18  ;;  %v1831_v42 = vpack.c.bf16 %v304_v22, %v303_v50  ;;  %v306_v26 = vmul.f32 %v2431_v63, %v2290_v28  ;;  %v291_v25 = vmul.f32 %v2310_v31, %v2405_v18 }
  0xfe   :  { %1793 = vmatpush3.bf16.xpose.msk.msra.mxu0 %vm2435_vm6, %v1791_v23  ;;  %v1803_v9 = vpack.c.bf16 %v290_v40, %v289_v61  ;;  %v292_v14 = vmul.f32 %v2403_v17, %v2305_v30  ;;  %v307_v29 = vmul.f32 %v2310_v31, %v2439_v7  ;;  %v308_v54 = vmul.f32 %v2431_v63, %v2305_v30 }
  0xff   :  { %1794 = vmatprep.subr.bf16.mxu0 %v2804_v57  ;;  %v1835_v0 = vpack.c.bf16 %v306_v26, %v305_v16  ;;  %v293_v28 = vmul.f32 %v2327_v35, %v2405_v18  ;;  %v294_v1 = vmul.f32 %v2403_v17, %v2322_v33  ;;  %v309_v2 = vmul.f32 %v2327_v35, %v2439_v7  ;;  %v2626_v35 = vpop.permute.xlu1 %671  ;;  %v2628_v17 = vpop.permute.xlu0 %677 }
 0x100   :  { %v1807_v6 = vpack.c.bf16 %v292_v14, %v291_v25  ;;  %v1839_v8 = vpack.c.bf16 %v308_v54, %v307_v29  ;;  %v310_v31 = vmul.f32 %v2431_v63, %v2322_v33  ;;  %v2805_v33 = vmov 0.0  }
 0x101   :  { %1981 = vrot.lane.b32.xlu0 %v1980_v27, %s2079_s18  ;;  %2011 = vrot.lane.b32.xlu1 %v2010_v32, %s2079_s18  ;;  %v1811_v30 = vpack.c.bf16 %v294_v1, %v293_v28 }
 0x102   :  { %1825 = vmatpush3.bf16.xpose.msk.msra.mxu1 %vm2435_vm6, %v1823_v34  ;;  %v1843_v18 = vpack.c.bf16 %v310_v31, %v309_v2 }
 0x103   :  { %1826 = vmatprep.subr.bf16.mxu1 %v2804_v57 }
 0x105   :  { %2026 = vrot.lane.b32.xlu0 %v2025_v41, %s2079_s18  ;;  %2016 = vrot.lane.b32.xlu1 %v2015_v59, %s2079_s18 }
 0x106   :  { %1797 = vmatpush3.bf16.xpose.msk.msra.mxu0 %vm2435_vm6, %v1795_v58 }
 0x107   :  { %1798 = vmatprep.subr.bf16.mxu0 %v2804_v57 }
 0x109   :  { %2031 = vrot.lane.b32.xlu0 %v2030_v56, %s2079_s18  ;;  %2021 = vrot.lane.b32.xlu1 %v2020_v60, %s2079_s18 }
 0x10a   :  { %1829 = vmatpush3.bf16.xpose.msk.msra.mxu1 %vm2435_vm6, %v1827_v62 }
 0x10b   :  { %1830 = vmatprep.subr.bf16.mxu1 %v2804_v57 }
 0x10d   :  { %681 = vrot.lane.b32.xlu1 %v2333_v36, %s2079_s18  ;;  %687 = vrot.lane.b32.xlu0 %v2333_v36, %s2080_s16 }
 0x10e   :  { %1801 = vmatpush3.bf16.xpose.msk.msra.mxu0 %vm2435_vm6, %v1799_v21 }
 0x10f   :  { %1802 = vmatprep.subr.bf16.mxu0 %v2804_v57 }
 0x111   :  { %683 = vrot.lane.b32.xlu1 %v2338_v38, %s2079_s18 }
 0x112   :  { %1833 = vmatpush3.bf16.xpose.msk.msra.mxu1 %vm2435_vm6, %v1831_v42 }
 0x113   :  { %1834 = vmatprep.subr.bf16.mxu1 %v2804_v57 }
 0x115   :  { %689 = vrot.lane.b32.xlu1 %v2338_v38, %s2080_s16 }
 0x116   :  { %1805 = vmatpush3.bf16.xpose.msk.msra.mxu0 %vm2435_vm6, %v1803_v9 }
 0x117   :  { %1806 = vmatprep.subr.bf16.mxu0 %v2804_v57 }
 0x11a   :  { %1837 = vmatpush3.bf16.xpose.msk.msra.mxu1 %vm2435_vm6, %v1835_v0 }
 0x11b   :  { %1838 = vmatprep.subr.bf16.mxu1 %v2804_v57 }
 0x11e   :  { %1809 = vmatpush3.bf16.xpose.msk.msra.mxu0 %vm2435_vm6, %v1807_v6 }
 0x11f   :  { %1810 = vmatprep.subr.bf16.mxu0 %v2804_v57 }
 0x122   :  { %1841 = vmatpush3.bf16.xpose.msk.msra.mxu1 %vm2435_vm6, %v1839_v8 }
 0x123   :  { %1842 = vmatprep.subr.bf16.mxu1 %v2804_v57 }
 0x126   :  { %1813 = vmatpush3.bf16.xpose.msk.msra.mxu0 %vm2435_vm6, %v1811_v30 }
 0x127   :  { %1846 = vmatprep.subr.bf16.mxu0 %v2804_v57 }
 0x12a   :  { %1845 = vmatpush3.bf16.xpose.msk.msra.mxu1 %vm2435_vm6, %v1843_v18 }
 0x12b   :  { %1870 = vmatprep.subr.bf16.mxu1 %v2804_v57 }
 0x12d   :  { %1602 = vmatmul.mubr.msk.f32.vlgmr.msra.gmra.mrb[0].mxu0 %vm61_vm0, %v2401_v13 }
 0x12e   :  { %1671 = vmatprep.mubr.msk.f32.mxu0 %vm2077_vm1, %v2805_v33 }
 0x131   :  { %1637 = vmatmul.mubr.msk.f32.vlgmr.msra.gmra.mrb[6].mxu1 %vm61_vm0, %v2399_v12 }
 0x132   :  { %1706 = vmatprep.mubr.msk.f32.mxu1 %vm2077_vm1, %v2805_v33 }
 0x15f   :  { %v2630_v63 = vpop.permute.xlu1 %1986  ;;  %v1957_v3 = vpop.permute.xlu0 %1956 }
 0x160   :  { %v1959_v7 = vunpack.i.h.bf16 %v1957_v3  ;;  %v1958_v23 = vunpack.i.l.bf16 %v1957_v3  ;;  %v1989_v26 = vunpack.i.h.bf16 %v2630_v63  ;;  %v1988_v25 = vunpack.i.l.bf16 %v2630_v63 }
 0x162   :  { %v1847_v24 = vpack.c.bf16 %v1959_v7, %v1958_v23  ;;  %v1865_v1 = vpack.c.bf16 %v1989_v26, %v1988_v25 }
 0x163   :  { %v2632_v13 = vpop.permute.xlu1 %1991  ;;  %v1962_v45 = vpop.permute.xlu0 %1961 }
 0x164   :  { %v1964_v44 = vunpack.i.h.bf16 %v1962_v45  ;;  %v1963_v27 = vunpack.i.l.bf16 %v1962_v45  ;;  %1848 = vmatpush3.bf16.msra.mxu0 %v1847_v24  ;;  %v1994_v2 = vunpack.i.h.bf16 %v2632_v13  ;;  %v1993_v6 = vunpack.i.l.bf16 %v2632_v13 }
 0x165   :  { %1849 = vmatprep.subr.bf16.mxu0 %v2804_v57 }
 0x166   :  { %v1850_v12 = vpack.c.bf16 %v1964_v44, %v1963_v27  ;;  %v1868_v33 = vpack.c.bf16 %v1994_v2, %v1993_v6  ;;  %v251_v27 = vsel %vm250_vm2, %v2333_v36, 0.0  ;;  %v702_v36 = vsel %vm700_vm4, %v2393_v4, %v2626_v35 }
 0x167   :  { %v1967_v15 = vpop.permute.xlu0 %1966  ;;  %v1997_v47 = vpop.permute.xlu1 %1996  ;;  %252 = vadd.xlane.f32.xlu0 %v251_v27  ;;  %v1217_v27 = vld [vmem:[%s2791_s11 + $0x8] sm:$0xff] }
 0x168   :  { %v1969_v32 = vunpack.i.h.bf16 %v1967_v15  ;;  %v1968_v46 = vunpack.i.l.bf16 %v1967_v15  ;;  %v1999_v20 = vunpack.i.h.bf16 %v1997_v47  ;;  %v1998_v39 = vunpack.i.l.bf16 %v1997_v47  ;;  %1851 = vmatpush3.bf16.msra.mxu0 %v1850_v12  ;;  %v986_v15 = vld [vmem:[%s2786_s6] sm:$0xff]  ;;  %v987_v47 = vld [vmem:[%s2786_s6 + $0x8] sm:$0xff] }
 0x169   :  { %1852 = vmatprep.subr.bf16.mxu0 %v2804_v57  ;;  %v254_v12 = vsel %vm250_vm2, %v2338_v38, 0.0 }
 0x16a   :  { %v1853_v34 = vpack.c.bf16 %v1969_v32, %v1968_v46  ;;  %v1871_v19 = vpack.c.bf16 %v1999_v20, %v1998_v39  ;;  %255 = vadd.xlane.f32.xlu1 %v254_v12  ;;  %v1894_v32 = vpack.c.bf16 %v987_v47, %v986_v15  ;;  %v705_v39 = vsel %vm703_vm5, %v702_v36, %v2628_v17  ;;  %v989_v17 = vld [vmem:[%s2786_s6 + $0x18] sm:$0xff]  ;;  %v1218_v12 = vld [vmem:[%s2791_s11 + $0x10] sm:$0xff]  ;;  %v1221_v36 = vld [vmem:[%s2791_s11 + $0x28] sm:$0xff] }
 0x16b   :  { %v1972_v11 = vpop.permute.xlu0 %1971  ;;  %v2002_v37 = vpop.permute.xlu1 %2001  ;;  %v1219_v47 = vld [vmem:[%s2791_s11 + $0x18] sm:$0xff] }
 0x16c   :  { %v1974_v58 = vunpack.i.h.bf16 %v1972_v11  ;;  %v1973_v41 = vunpack.i.l.bf16 %v1972_v11  ;;  %v2004_v53 = vunpack.i.h.bf16 %v2002_v37  ;;  %v2003_v52 = vunpack.i.l.bf16 %v2002_v37  ;;  %1854 = vmatpush3.bf16.msra.mxu0 %v1853_v34  ;;  %1872 = vmatpush3.bf16.msra.mxu1 %v1871_v19 }
 0x16d   :  { %1855 = vmatprep.subr.bf16.mxu0 %v2804_v57  ;;  %1873 = vmatprep.subr.bf16.mxu1 %v2804_v57 }
 0x16e   :  { %v1856_v59 = vpack.c.bf16 %v1974_v58, %v1973_v41  ;;  %v1874_v49 = vpack.c.bf16 %v2004_v53, %v2003_v52 }
 0x16f   :  { %v1977_v48 = vpop.permute.xlu0 %1976  ;;  %v2007_v56 = vpop.permute.xlu1 %2006 }
 0x170   :  { %v1979_v55 = vunpack.i.h.bf16 %v1977_v48  ;;  %v1978_v51 = vunpack.i.l.bf16 %v1977_v48  ;;  %v2009_v43 = vunpack.i.h.bf16 %v2007_v56  ;;  %v2008_v60 = vunpack.i.l.bf16 %v2007_v56  ;;  %1857 = vmatpush3.bf16.msra.mxu0 %v1856_v59  ;;  %1875 = vmatpush3.bf16.msra.mxu1 %v1874_v49 }
 0x171   :  { %1858 = vmatprep.subr.bf16.mxu0 %v2804_v57  ;;  %1876 = vmatprep.subr.bf16.mxu1 %v2804_v57 }
 0x172   :  { %v1859_v50 = vpack.c.bf16 %v1979_v55, %v1978_v51  ;;  %v1877_v22 = vpack.c.bf16 %v2009_v43, %v2008_v60 }
 0x173   :  { %v1982_v61 = vpop.permute.xlu0 %1981  ;;  %v2012_v62 = vpop.permute.xlu1 %2011 }
 0x174   :  { %v1984_v21 = vunpack.i.h.bf16 %v1982_v61  ;;  %v1983_v40 = vunpack.i.l.bf16 %v1982_v61  ;;  %v2014_v16 = vunpack.i.h.bf16 %v2012_v62  ;;  %v2013_v42 = vunpack.i.l.bf16 %v2012_v62  ;;  %1860 = vmatpush3.bf16.msra.mxu0 %v1859_v50  ;;  %1878 = vmatpush3.bf16.msra.mxu1 %v1877_v22 }
 0x175   :  { %1861 = vmatprep.subr.bf16.mxu0 %v2804_v57  ;;  %1879 = vmatprep.subr.bf16.mxu1 %v2804_v57 }
 0x176   :  { %v1862_v9 = vpack.c.bf16 %v1984_v21, %v1983_v40  ;;  %v1880_v14 = vpack.c.bf16 %v2014_v16, %v2013_v42 }
 0x177   :  { %v2017_v29 = vpop.permute.xlu1 %2016  ;;  %v2027_v28 = vpop.permute.xlu0 %2026 }
 0x178   :  { %v2019_v54 = vunpack.i.h.bf16 %v2017_v29  ;;  %v2018_v0 = vunpack.i.l.bf16 %v2017_v29  ;;  %1863 = vmatpush3.bf16.msra.mxu0 %v1862_v9  ;;  %1881 = vmatpush3.bf16.msra.mxu1 %v1880_v14  ;;  %v2029_v63 = vunpack.i.h.bf16 %v2027_v28  ;;  %v2028_v3 = vunpack.i.l.bf16 %v2027_v28  ;;  %v2806_v29 = vld [vmem:[#allocation5_spill] sm:$0xff] }
 0x179   :  { %1864 = vmatprep.subr.bf16.mxu0 %v2804_v57  ;;  %1882 = vmatprep.subr.bf16.mxu1 %v2804_v57 }
 0x17a   :  { %v1883_v8 = vpack.c.bf16 %v2019_v54, %v2018_v0  ;;  %v1889_v24 = vpack.c.bf16 %v2029_v63, %v2028_v3  ;;  %v1118_v3 = vld [vmem:[%s2789_s9] sm:$0xff] }
 0x17b   :  { %v2022_v31 = vpop.permute.xlu1 %2021  ;;  %v2032_v23 = vpop.permute.xlu0 %2031 }
 0x17c   :  { %v2024_v30 = vunpack.i.h.bf16 %v2022_v31  ;;  %v2023_v18 = vunpack.i.l.bf16 %v2022_v31  ;;  %1866 = vmatpush3.bf16.msra.mxu0 %v1865_v1  ;;  %1884 = vmatpush3.bf16.msra.mxu1 %v1883_v8  ;;  %v2034_v13 = vunpack.i.h.bf16 %v2032_v23  ;;  %v2033_v45 = vunpack.i.l.bf16 %v2032_v23  ;;  %v1120_v23 = vld [vmem:[%s2789_s9 + $0x10] sm:$0xff] }
 0x17d   :  { %1867 = vmatprep.subr.bf16.mxu0 %v2804_v57  ;;  %1885 = vmatprep.subr.bf16.mxu1 %v2804_v57 }
 0x17e   :  { %v1886_v7 = vpack.c.bf16 %v2024_v30, %v2023_v18  ;;  %v1892_v44 = vpack.c.bf16 %v2034_v13, %v2033_v45  ;;  %v1121_v13 = vld [vmem:[%s2789_s9 + $0x18] sm:$0xff] }
 0x17f   :  { %v688_v20 = vpop.permute.xlu0 %687  ;;  %v1906_v45 = vpack.c.bf16 %v1121_v13, %v1120_v23 }
 0x180   :  { %1869 = vmatpush3.bf16.msra.mxu0 %v1868_v33  ;;  %1887 = vmatpush3.bf16.msra.mxu1 %v1886_v7  ;;  %v1119_v7 = vld [vmem:[%s2789_s9 + $0x8] sm:$0xff] }
 0x181   :  { %1888 = vmatprep.subr.bf16.mxu1 %v2804_v57 }
 0x184   :  { %1890 = vmatpush3.bf16.msra.mxu1 %v1889_v24  ;;  %v1902_v24 = vpack.c.bf16 %v1119_v7, %v1118_v3 }
 0x185   :  { %1891 = vmatprep.subr.bf16.mxu1 %v2804_v57  ;;  %v682_v57 = vpop.permute.xlu1 %681 }
 0x186   :  { %v707_v38 = vsel %vm706_vm7, %v2397_v10, %v682_v57  ;;  %v988_v10 = vld [vmem:[%s2786_s6 + $0x10] sm:$0xff]  ;;  %v1220_v57 = vld [vmem:[%s2791_s11 + $0x20] sm:$0xff] }
 0x187   :  { %v710_v37 = vsel %vm709_vm8, %v707_v38, %v688_v20  ;;  %v1898_v48 = vpack.c.bf16 %v989_v17, %v988_v10  ;;  %v1222_v38 = vld [vmem:[%s2791_s11 + $0x30] sm:$0xff]  ;;  %v1223_v20 = vld [vmem:[%s2791_s11 + $0x38] sm:$0xff]  ;;  %v1420_v17 = vld [vmem:[%s2787_s7] ss:$0 sm:$0xff] }
 0x188   :  { %1893 = vmatpush3.bf16.msra.mxu1 %v1892_v44  ;;  %v1216_v44 = vld [vmem:[%s2791_s11] sm:$0xff] }
 0x189   :  { %1895 = vmatprep.subr.bf16.mxu1 %v1894_v32  ;;  %v684_v46 = vpop.permute.xlu1 %683  ;;  %v1910_v15 = vpack.c.bf16 %v1217_v27, %v1216_v44 }
 0x18a   :  { %v708_v58 = vsel %vm706_vm7, %v705_v39, %v684_v46  ;;  %v1918_v46 = vpack.c.bf16 %v1221_v36, %v1220_v57  ;;  %v1922_v39 = vpack.c.bf16 %v1223_v20, %v1222_v38 }
 0x18b   :  { %1911 = vmatprep.subr.bf16.mxu0 %v1910_v15 }
 0x18d   :  { %v690_v41 = vpop.permute.xlu1 %689 }
 0x18e   :  { %v711_v4 = vsel %vm709_vm8, %v708_v58, %v690_v41  ;;  %v1227_v58 = vld [vmem:[%s2791_s11 + $0x58] sm:$0xff] }
 0x1f4   :  { %v253_v56 = vpop.xlane.xlu0 %252 }
 0x1f5   :  { %v257_v55 = vmax.f32 %v253_v56, 1.0  ;;  %v1421_v56 = vld [vmem:[%s2788_s8] ss:$0 sm:$0xff] }
 0x1f7   :  { %v256_v51 = vpop.xlane.xlu1 %255  ;;  %2035 = vrcp.f32 %v257_v55 }
 0x1f8   :  { %v258_v43 = vmax.f32 %v256_v51, 1.0 }
 0x1fa   :  { %2037 = vrcp.f32 %v258_v43 }
 0x200   :  { %v524_v34 = vpop.f32.mrb[0].mxu0 }
 0x201   :  { %v712_v19 = vmax.f32 %v524_v34, 0.0  ;;  %v1603_v11 = vpop.f32.mrb[1].mxu0  ;;  %v2036_v60 = vpop.eup %2035  ;;  %v1224_v34 = vld [vmem:[%s2791_s11 + $0x40] sm:$0xff] }
 0x202   :  { %v260_v50 = vmul.f32 0.5, %v2036_v60 }
 0x203   :  { %v714_v53 = vmul.f32 %v712_v19, %v710_v37  ;;  %v1225_v19 = vld [vmem:[%s2791_s11 + $0x48] sm:$0xff]  ;;  %v1226_v37 = vld [vmem:[%s2791_s11 + $0x50] sm:$0xff] }
 0x204   :  { %v645_v52 = vpop.f32.mrb[6].mxu1  ;;  %v2038_v22 = vpop.eup %2037  ;;  %v1926_v11 = vpack.c.bf16 %v1225_v19, %v1224_v34  ;;  %v1930_v41 = vpack.c.bf16 %v1227_v58, %v1226_v37  ;;  %v1427_v37 = vld [vmem:[%s2794_s14] ss:$0 sm:$0xff] }
 0x205   :  { %v713_v59 = vmax.f32 %v645_v52, 0.0  ;;  %v1638_v49 = vpop.f32.mrb[7].mxu1  ;;  %1672 = vmatmul.mubr.f32.vlgmr.msra.gmra.mrb[2].mxu0 %v714_v53  ;;  %v262_v40 = vmul.f32 0.5, %v2038_v22 }
 0x206   :  { %1913 = vmatpush3.bf16.msra.mxu0 %v1910_v15 }
 0x207   :  { %v715_v35 = vmul.f32 %v713_v59, %v711_v4 }
 0x209   :  { %1707 = vmatmul.mubr.f32.vlgmr.msra.gmra.mrb[8].mxu1 %v715_v35 }
 0x20a   :  { %1897 = vmatpush3.bf16.msra.mxu1 %v1894_v32  ;;  %v1914_v32 = vpack.c.bf16 %v1219_v47, %v1218_v12 }
 0x20b   :  { %1899 = vmatprep.subr.bf16.mxu1 %v1898_v48 }
 0x20c   :  { %1915 = vmatprep.subr.bf16.mxu0 %v1914_v32 }
 0x20d   :  { %1917 = vmatpush3.bf16.msra.mxu0 %v1914_v32 }
 0x20e   :  { %1901 = vmatpush3.bf16.msra.mxu1 %v1898_v48  ;;  %1919 = vmatprep.subr.bf16.mxu0 %v1918_v46 }
 0x20f   :  { %1903 = vmatprep.subr.bf16.mxu1 %v1902_v24 }
 0x211   :  { %1921 = vmatpush3.bf16.msra.mxu0 %v1918_v46 }
 0x212   :  { %1923 = vmatprep.subr.bf16.mxu0 %v1922_v39 }
 0x215   :  { %1925 = vmatpush3.bf16.msra.mxu0 %v1922_v39  ;;  %v1426_v39 = vld [vmem:[%s2793_s13] ss:$0 sm:$0xff] }
 0x216   :  { %1927 = vmatprep.subr.bf16.mxu0 %v1926_v11 }
 0x219   :  { %1929 = vmatpush3.bf16.msra.mxu0 %v1926_v11 }
 0x21a   :  { %1931 = vmatprep.subr.bf16.mxu0 %v1930_v41 }
 0x21d   :  { %1933 = vmatpush3.bf16.msra.mxu0 %v1930_v41 }
 0x2d8   :  { %v846_v61 = vpop.f32.mrb[2].mxu0 }
 0x2d9   :  { %v984_v62 = vmul.f32 %v846_v61, %v260_v50  ;;  %v1673_v21 = vpop.f32.mrb[3].mxu0  ;;  %v1228_v61 = vld [vmem:[%s2791_s11 + $0x60] sm:$0xff] }
 0x2db   :  { %1717 = vmatprep.mubr.msk.f32.mxu1 %vm61_vm0, %v984_v62  ;;  %v1229_v62 = vld [vmem:[%s2791_s11 + $0x68] sm:$0xff] }
 0x2dc   :  { %v980_v16 = vpop.f32.mrb[8].mxu1  ;;  %v1934_v21 = vpack.c.bf16 %v1229_v62, %v1228_v61 }
 0x2dd   :  { %v985_v42 = vmul.f32 %v980_v16, %v262_v40  ;;  %v1708_v26 = vpop.f32.mrb[9].mxu1  ;;  %v1230_v40 = vld [vmem:[%s2791_s11 + $0x70] sm:$0xff]  ;;  %v1231_v16 = vld [vmem:[%s2791_s11 + $0x78] sm:$0xff] }
 0x2de   :  { %1935 = vmatprep.subr.bf16.mxu0 %v1934_v21  ;;  %v1422_v26 = vld [vmem:[%s2790_s10] ss:$0 sm:$0xff] }
 0x2df   :  { %1718 = vmatmul.mubr.msk.f32.vlgmr.msra.gmra.mrb[10].mxu1 %vm61_vm0, %v985_v42  ;;  %v1938_v42 = vpack.c.bf16 %v1231_v16, %v1230_v40  ;;  %1937 = vmatpush3.bf16.msra.mxu0 %v1934_v21 }
 0x2e0   :  { %1905 = vmatpush3.bf16.msra.mxu1 %v1902_v24 }
 0x2e1   :  { %1907 = vmatprep.subr.bf16.mxu1 %v1906_v45  ;;  %1939 = vmatprep.subr.bf16.mxu0 %v1938_v42 }
 0x2e3   :  { %1941 = vmatpush3.bf16.msra.mxu0 %v1938_v42 }
 0x2e4   :  { %1909 = vmatpush3.bf16.msra.mxu1 %v1906_v45 }
 0x3b2   :  { %v1719_v25 = vpop.f32.mrb[10].mxu1 }
 0x3b3   :  { %v1062_v9 = vpop.f32.mrb[11].mxu1  ;;  %v1072_v54 = vadd.f32 %v1719_v25, %v2806_v29 }
 0x3b4   :  { %v1071_v14 = vadd.f32 %v1062_v9, %v2179_v5 }
 0x3b5   :  { %v1078_v28 = vsel %vm61_vm0, %v1072_v54, 0.0 }
 0x3b6   :  { %v1075_v0 = vsel %vm61_vm0, %v1071_v14, 0.0 }
 0x3b7   :  { %1076 = vadd.xlane.f32.xlu0 %v1075_v0 }
 0x3bb   :  { %1079 = vadd.xlane.f32.xlu0 %v1078_v28 }
 0x444   :  { %v1077_v1 = vpop.xlane.xlu0 %1076 }
 0x445   :  { %v1082_v2 = vmul.f32 0.03125, %v1077_v1 }
 0x447   :  { %v1084_v6 = vsub.f32 %v1071_v14, %v1082_v2  ;;  %v1425_v2 = vld [vmem:[%s2792_s12] ss:$0 sm:$0xff] }
 0x448   :  { %v1080_v8 = vpop.xlane.xlu0 %1079 }
 0x449   :  { %v1083_v31 = vmul.f32 0.03125, %v1080_v8  ;;  %v1086_v30 = vmul.f32 %v1084_v6, %v1084_v6 }
 0x44b   :  { %v1085_v18 = vsub.f32 %v1072_v54, %v1083_v31  ;;  %v1088_v33 = vsel %vm61_vm0, %v1086_v30, 0.0 }
 0x44c   :  { %1089 = vadd.xlane.f32.xlu1 %v1088_v33 }
 0x44d   :  { %v1087_v63 = vmul.f32 %v1085_v18, %v1085_v18 }
 0x44f   :  { %v1091_v5 = vsel %vm61_vm0, %v1087_v63, 0.0 }
 0x450   :  { %1092 = vadd.xlane.f32.xlu0 %v1091_v5 }
 0x4d9   :  { %v1090_v53 = vpop.xlane.xlu1 %1089 }
 0x4da   :  { %v1094_v52 = vmul.f32 0.03125, %v1090_v53 }
 0x4dc   :  { %v1096_v59 = vadd.f32 1e-06, %v1094_v52 }
 0x4dd   :  { %v1093_v49 = vpop.xlane.xlu0 %1092 }
 0x4de   :  { %2039 = vrsqrt.f32 %v1096_v59  ;;  %v1095_v4 = vmul.f32 0.03125, %v1093_v49 }
 0x4e0   :  { %v1097_v35 = vadd.f32 1e-06, %v1095_v4 }
 0x4e2   :  { %2041 = vrsqrt.f32 %v1097_v35 }
 0x4e8   :  { %v2040_v10 = vpop.eup %2039 }
 0x4e9   :  { %v1100_v48 = vmul.f32 %v2040_v10, %v1084_v6 }
 0x4eb   :  { %v1108_v55 = vmul.f32 %v1420_v17, %v1100_v48 }
 0x4ec   :  { %v2042_v51 = vpop.eup %2041 }
 0x4ed   :  { %v1101_v43 = vmul.f32 %v2042_v51, %v1085_v18  ;;  %v1116_v60 = vadd.f32 %v1421_v56, %v1108_v55 }
 0x4ef   :  { %v1109_v50 = vmul.f32 %v1420_v17, %v1101_v43  ;;  %1728 = vmatprep.mubr.msk.f32.mxu1 %vm61_vm0, %v1116_v60 }
 0x4f1   :  { %v1117_v22 = vadd.f32 %v1421_v56, %v1109_v50 }
 0x4f3   :  { %1729 = vmatmul.mubr.msk.f32.vlgmr.msra.gmra.mrb[12].mxu1 %vm61_vm0, %v1117_v22 }
 0x5c6   :  { %v1730_v25 = vpop.f32.mrb[12].mxu1 }
 0x5c7   :  { %v1207_v9 = vadd.f32 %v1730_v25, %v1422_v26  ;;  %v1201_v14 = vpop.f32.mrb[13].mxu1 }
 0x5c8   :  { %v1202_v29 = vadd.f32 %v1422_v26, %v1201_v14 }
 0x5c9   :  { %v1213_v54 = vmul.f32 0.2, %v1207_v9  ;;  %vm1211_vm9 = vcmp.gt.f32.partialorder %v1207_v9, 0.0 }
 0x5ca   :  { %v1212_v0 = vmul.f32 0.2, %v1202_v29  ;;  %vm1210_vm10 = vcmp.gt.f32.partialorder %v1202_v29, 0.0 }
 0x5cb   :  { %v1215_v1 = vsel %vm1211_vm9, %v1207_v9, %v1213_v54 }
 0x5cc   :  { %v1214_v28 = vsel %vm1210_vm10, %v1202_v29, %v1212_v0 }
 0x5cd   :  { %1763 = vmatprep.mubr.f32.mxu0 %v1214_v28 }
 0x5ce   :  { %1764 = vmatmul.mubr.f32.vlgmr.msra.gmra.mrb[4].mxu0 %v1215_v1 }
 0x6a1   :  { %v1765_v6 = vpop.f32.mrb[4].mxu0 }
 0x6a2   :  { %v1311_v8 = vadd.f32 %v1765_v6, %v1425_v2  ;;  %v1305_v31 = vpop.f32.mrb[5].mxu0 }
 0x6a3   :  { %v1306_v30 = vadd.f32 %v1425_v2, %v1305_v31 }
 0x6a4   :  { %v1315_v18 = vadd.f32 %v1311_v8, %v1117_v22 }
 0x6a5   :  { %v1314_v33 = vadd.f32 %v1306_v30, %v1116_v60 }
 0x6a6   :  { %v1321_v63 = vsel %vm61_vm0, %v1315_v18, 0.0 }
 0x6a7   :  { %1322 = vadd.xlane.f32.xlu0 %v1321_v63  ;;  %v1318_v5 = vsel %vm61_vm0, %v1314_v33, 0.0 }
 0x6a8   :  { %1319 = vadd.xlane.f32.xlu1 %v1318_v5 }
 0x734   :  { %v1323_v3 = vpop.xlane.xlu0 %1322 }
 0x735   :  { %v1325_v7 = vmul.f32 0.03125, %v1323_v3  ;;  %v1320_v23 = vpop.xlane.xlu1 %1319 }
 0x736   :  { %v1324_v24 = vmul.f32 0.03125, %v1320_v23 }
 0x737   :  { %v1327_v13 = vsub.f32 %v1315_v18, %v1325_v7 }
 0x738   :  { %v1326_v45 = vsub.f32 %v1314_v33, %v1324_v24 }
 0x739   :  { %v1329_v44 = vmul.f32 %v1327_v13, %v1327_v13 }
 0x73a   :  { %v1328_v27 = vmul.f32 %v1326_v45, %v1326_v45 }
 0x73b   :  { %v1333_v12 = vsel %vm61_vm0, %v1329_v44, 0.0 }
 0x73c   :  { %1334 = vadd.xlane.f32.xlu0 %v1333_v12  ;;  %v1330_v15 = vsel %vm61_vm0, %v1328_v27, 0.0 }
 0x73d   :  { %1331 = vadd.xlane.f32.xlu1 %v1330_v15 }
 0x7c9   :  { %v1335_v47 = vpop.xlane.xlu0 %1334 }
 0x7ca   :  { %v1337_v32 = vmul.f32 0.03125, %v1335_v47  ;;  %v1332_v57 = vpop.xlane.xlu1 %1331 }
 0x7cb   :  { %v1336_v36 = vmul.f32 0.03125, %v1332_v57 }
 0x7cc   :  { %v1339_v46 = vadd.f32 1e-06, %v1337_v32 }
 0x7cd   :  { %v1338_v38 = vadd.f32 1e-06, %v1336_v36 }
 0x7ce   :  { %2043 = vrsqrt.f32 %v1339_v46 }
 0x7cf   :  { %2045 = vrsqrt.f32 %v1338_v38 }
 0x7d8   :  { %v2044_v20 = vpop.eup %2043 }
 0x7d9   :  { %v2046_v34 = vpop.eup %2045  ;;  %v1343_v19 = vmul.f32 %v2044_v20, %v1327_v13 }
 0x7da   :  { %v1342_v11 = vmul.f32 %v2046_v34, %v1326_v45 }
 0x7db   :  { %v1351_v58 = vmul.f32 %v1426_v39, %v1343_v19 }
 0x7dc   :  { %v1350_v41 = vmul.f32 %v1426_v39, %v1342_v11 }
 0x7dd   :  { %v1359_v53 = vadd.f32 %v1427_v37, %v1351_v58 }
 0x7de   :  { %v1358_v52 = vadd.f32 %v1427_v37, %v1350_v41 }
 0x7df   :  { %1361 = vst.msk [vmem:[#allocation2 + $0x8] sm:$0xff] %vm61_vm0, %v1359_v53 }
 0x7e0   :  { %1360 = vst.msk [vmem:[#allocation2] sm:$0xff] %vm61_vm0, %v1358_v52 }
 0x7e1   :  { %2058 = shalt.err (!%p2055_p4)
}
 0x7e2   :  { %s2059_s26 = scalar_lea.hbm %s2795_s15, 256 }
 0x7e3   :  { %p2060_p5 = scmp.ne.s32.totalorder %s2795_s15, %s2059_s26  ;;  %p2063_p6 = scmp.lt.u32.totalorder %s2059_s26, %s2795_s15 }
 0x7e5   :  { %p2065_p7 = pnand %p2063_p6, %p2060_p5 }
 0x7e7   :  { %2068 = shalt.err (!%p2065_p7)
}
 0x7e8   :  { %s2082_s3 = smov 128   ;;  %s2083_s30 = smov 8  }
 0x7e9   :  { %1373 = dma.vmem_to_hbm [thread:$0]  %s1368_s24, 256, %s2795_s15, [#allocation3], %s2082_s3, %s2082_s3, %s2083_s30  }
 0x7ea   :  { %2069 = dma.done.wait [#allocation3], 256  }
 0x7eb   :  { %2070 = vsyncadd [#allocation3], 4294967040 }
 0x7ec   :  { %1377 = vsyncpa [#allocation3], 1 }

</bundles_post_ra>
